<compile_context>
chip_gen: v7x
topology: tpu7x:2x2x1
jax: 0.10.0
libtpu: 0.0.40
codegen_flags: <defaults>
</compile_context>

<pallas_src>
import functools

import jax
import jax.numpy as jnp
from jax.experimental import pallas as pl
from jax.experimental.pallas import tpu as pltpu

OUT_W = 128  # lane-dense padded width for the narrow (n_class / n_tag) outputs


# ---------------------------------------------------------------------------
# Fused BiLSTM + attention + heads kernel (everything resident in VMEM).
# ---------------------------------------------------------------------------
def _fused_kernel(T, Bp, H,
                  emb_ref, embr_ref, lmf_ref, lmb_ref, abias_ref,
                  wihf_ref, wihb_ref, bih_ref, whh_ref,
                  w1f_ref, w1b_ref, b1_ref, w2_ref, b2_ref,
                  wmf_ref, wmb_ref, bm_ref,
                  wc_ref, bc_ref, wtf_ref, wtb_ref, bt_ref,
                  logits_ref, tags_ref,
                  gx_sc, hsf_sc, hsb_sc):
    f32 = jnp.float32
    bf16 = jnp.bfloat16
    G = 4 * H

    # ---- input projections for every timestep: two fat MXU matmuls (bf16 in, f32 acc)
    xf = emb_ref[...].reshape(T * Bp, -1)                  # (T*Bp, D)  time-major
    xb = embr_ref[...].reshape(T * Bp, -1)                 # time-reversed input (bwd dir)
    gx_f = jnp.dot(xf, wihf_ref[...], preferred_element_type=f32)     # (T*Bp, 4H)
    gx_b = jnp.dot(xb, wihb_ref[...], preferred_element_type=f32)     # (T*Bp, 4H)
    gx = jnp.concatenate([gx_f, gx_b], axis=-1) + bih_ref[...]        # (T*Bp, 8H), one full store
    gx_sc[...] = gx.reshape(T, Bp, 2 * G)

    whh = whh_ref[...]                                     # (2H, 8H) bf16 block-diagonal

    # ---- serial time recurrence: one fused matmul + 4 EUP passes per step ----
    def step(t, carry):
        h_f, h_b, c_f, c_b = carry                         # each (Bp, H) f32
        h_cat = jnp.concatenate([h_f, h_b], axis=-1).astype(bf16)     # (Bp, 2H)
        g = gx_sc[t] + jnp.dot(h_cat, whh, preferred_element_type=f32)  # (Bp, 8H)

        sig = jax.nn.sigmoid(g)                            # 1 EUP pass, full vreg
        tnh = jnp.tanh(g)                                  # 1 EUP pass, full vreg
        # gate column layout: [i_f f_f g_f o_f | i_b f_b g_b o_b], each H wide
        c_f_n = sig[:, 1 * H:2 * H] * c_f + sig[:, 0 * H:1 * H] * tnh[:, 2 * H:3 * H]
        c_b_n = sig[:, G + 1 * H:G + 2 * H] * c_b + sig[:, G + 0 * H:G + 1 * H] * tnh[:, G + 2 * H:G + 3 * H]
        h_f_n = sig[:, 3 * H:4 * H] * jnp.tanh(c_f_n)
        h_b_n = sig[:, G + 3 * H:G + 4 * H] * jnp.tanh(c_b_n)

        m_f = lmf_ref[t]                                   # (Bp, 1) fwd validity at time t
        m_b = lmb_ref[t]                                   # (Bp, 1) bwd validity (reversed time)
        out_f = m_f * h_f_n                                # padded steps -> 0 (packed semantics)
        out_b = m_b * h_b_n
        hsf_sc[t] = out_f                                  # full-width lane-dense store
        hsb_sc[T - 1 - t] = out_b                          # bwd output belongs to original time

        h_f = out_f + (1.0 - m_f) * h_f                    # carry holds state through padding
        h_b = out_b + (1.0 - m_b) * h_b
        c_f = m_f * c_f_n + (1.0 - m_f) * c_f
        c_b = m_b * c_b_n + (1.0 - m_b) * c_b
        return h_f, h_b, c_f, c_b

    z = jnp.zeros((Bp, H), f32)
    jax.lax.fori_loop(0, T, step, (z, z, z, z), unroll=True)

    # ---- masked self-attention (batched over the whole padded batch) ----
    hs_f = hsf_sc[...]                                     # (T, Bp, H)
    hs_b = hsb_sc[...]
    hsf_flat = hs_f.reshape(T * Bp, H).astype(bf16)
    hsb_flat = hs_b.reshape(T * Bp, H).astype(bf16)

    u = jnp.tanh(jnp.dot(hsf_flat, w1f_ref[...], preferred_element_type=f32)
                 + jnp.dot(hsb_flat, w1b_ref[...], preferred_element_type=f32)
                 + b1_ref[...])                            # (T*Bp, H)
    e = jnp.dot(u.astype(bf16), w2_ref[...], preferred_element_type=f32) + b2_ref[...]

    e3 = e.reshape(T, Bp, 1) + abias_ref[...]              # additive mask bias (0 / -1e9)
    e3 = e3 - jnp.max(e3, axis=0, keepdims=True)
    p = jnp.exp(e3)
    alpha = p / jnp.sum(p, axis=0, keepdims=True)          # exact softmax (parity w/ torch)
    sent_f = jnp.sum(alpha * hs_f, axis=0)                 # (Bp, H)
    sent_b = jnp.sum(alpha * hs_b, axis=0)                 # (Bp, H)

    # ---- MLP + classifier head (lane-dense 128-wide padded output) ----
    h1 = (jnp.dot(sent_f.astype(bf16), wmf_ref[...], preferred_element_type=f32)
          + jnp.dot(sent_b.astype(bf16), wmb_ref[...], preferred_element_type=f32)
          + bm_ref[...])                                   # (Bp, mlp)  (no activation, per spec)
    logits_ref[...] = jnp.dot(h1.astype(bf16), wc_ref[...],
                              preferred_element_type=f32) + bc_ref[...]

    # ---- per-token sentiment-tag head, (t, b)-major rows, 128-wide padded ----
    tags_ref[...] = (jnp.dot(hsf_flat, wtf_ref[...], preferred_element_type=f32)
                     + jnp.dot(hsb_flat, wtb_ref[...], preferred_element_type=f32)
                     + bt_ref[...])


# ---------------------------------------------------------------------------
# Full forward pass (glue in JAX, hot path in one Pallas kernel).
# ---------------------------------------------------------------------------
def bilstm_classifier_forward(x_tokens, x_len, x_mask, params):
    B, T = x_tokens.shape
    D = params["embedding"].shape[1]
    H = params["whh_f"].shape[0]
    mlp_dim = params["w_mlp"].shape[1]
    n_class = params["w_cls"].shape[1]
    n_tag = params["w_tag"].shape[1]
    f32, bf16 = jnp.float32, jnp.bfloat16

    # pad batch to a multiple of 8 so vreg sublanes / MXU rows are fully used
    Bp = ((B + 7) // 8) * 8
    pad = Bp - B
    x_p = jnp.pad(x_tokens, ((0, pad), (0, 0)))
    len_p = jnp.pad(x_len, ((0, pad),))
    mask_p = jnp.pad(x_mask.astype(f32), ((0, pad), (0, 0)))

    # embedding gather directly into time-major layout; dropout = identity (eval)
    emb = params["embedding"][x_p.T].astype(bf16)                        # (T, Bp, D)
    emb_rev = emb[::-1]                                                  # reversed time for bwd dir

    # validity masks: LSTM mask from lengths (pack_padded semantics), attention
    # mask as a precomputed additive bias from x_mask.
    lmask = (jnp.arange(T, dtype=jnp.int32)[None, :] < len_p[:, None]).astype(f32)
    lmask_f = jnp.transpose(lmask)[:, :, None]                           # (T, Bp, 1)
    lmask_b = lmask_f[::-1]                                              # reversed-time validity
    attn_bias = (jnp.transpose(mask_p)[:, :, None] - 1.0) * 1e9          # (T, Bp, 1): 0 / -1e9

    # ---- kernel-layout weights (bf16 MXU operands, f32 biases) ----
    wih_f = params["wih_f"].astype(bf16)                                 # (D, 4H)
    wih_b = params["wih_b"].astype(bf16)
    b_ih = jnp.concatenate([params["b_f"], params["b_b"]], axis=1)       # (1, 8H)
    zeros_h = jnp.zeros((H, 4 * H), f32)
    whh_blk = jnp.concatenate(                                           # block-diag (2H, 8H)
        [jnp.concatenate([params["whh_f"], zeros_h], axis=1),
         jnp.concatenate([zeros_h, params["whh_b"]], axis=1)], axis=0).astype(bf16)

    w1_f = params["w_att1"][:H].astype(bf16)                             # (H, H)
    w1_b = params["w_att1"][H:].astype(bf16)
    b1 = params["b_att1"]
    w2 = params["w_att2"].astype(bf16)                                   # (H, 1)
    b2 = params["b_att2"]

    wm_f = params["w_mlp"][:H].astype(bf16)                              # (H, mlp)
    wm_b = params["w_mlp"][H:].astype(bf16)
    bm = params["b_mlp"]

    wc_pad = jnp.zeros((mlp_dim, OUT_W), f32).at[:, :n_class].set(params["w_cls"]).astype(bf16)
    bc_pad = jnp.zeros((1, OUT_W), f32).at[:, :n_class].set(params["b_cls"])
    wt_f_pad = jnp.zeros((H, OUT_W), f32).at[:, :n_tag].set(params["w_tag"][:H]).astype(bf16)
    wt_b_pad = jnp.zeros((H, OUT_W), f32).at[:, :n_tag].set(params["w_tag"][H:]).astype(bf16)
    bt_pad = jnp.zeros((1, OUT_W), f32).at[:, :n_tag].set(params["b_tag"])

    operands = (emb, emb_rev, lmask_f, lmask_b, attn_bias,
                wih_f, wih_b, b_ih, whh_blk,
                w1_f, w1_b, b1, w2, b2,
                wm_f, wm_b, bm,
                wc_pad, bc_pad, wt_f_pad, wt_b_pad, bt_pad)

    # ---- explicit VMEM budget + advisory cost so XLA schedules the glue well ----
    in_bytes = sum(int(o.size) * o.dtype.itemsize for o in operands)
    out_bytes = (Bp * OUT_W + T * Bp * OUT_W) * 4
    scratch_bytes = (T * Bp * 8 * H + 2 * T * Bp * H) * 4
    vmem_limit = max(4 * 1024 * 1024, int(1.5 * (in_bytes + out_bytes + scratch_bytes)))
    flops = int(4 * T * Bp * D * 4 * H                       # input projections
                + T * 2 * Bp * 2 * H * 8 * H                 # recurrent block-diag matmul
                + 2 * T * Bp * (2 * H * H + H)               # attention u / e
                + 2 * Bp * (2 * H * mlp_dim + mlp_dim * OUT_W)
                + 2 * T * Bp * 2 * H * OUT_W)                # tag head
    transcendentals = int(T * Bp * (16 * H + 2 * H) + T * Bp * (H + 1))

    vmem = pl.BlockSpec(memory_space=pltpu.MemorySpace.VMEM)
    kernel = functools.partial(_fused_kernel, T, Bp, H)
    logits_pad, tags_pad = pl.pallas_call(
        kernel,
        out_shape=(jax.ShapeDtypeStruct((Bp, OUT_W), f32),
                   jax.ShapeDtypeStruct((T * Bp, OUT_W), f32)),
        in_specs=[vmem] * len(operands),
        out_specs=(vmem, vmem),
        scratch_shapes=[pltpu.VMEM((T, Bp, 8 * H), f32),     # gx (all timestep gate inputs)
                        pltpu.VMEM((T, Bp, H), f32),         # hs_f (lane-dense)
                        pltpu.VMEM((T, Bp, H), f32)],        # hs_b (lane-dense)
        compiler_params=pltpu.CompilerParams(vmem_limit_bytes=vmem_limit),
        cost_estimate=pl.CostEstimate(flops=flops, transcendentals=transcendentals,
                                      bytes_accessed=in_bytes + out_bytes),
    )(*operands)

    logits = logits_pad[:B, :n_class]
    # kernel emits tag logits in (t, b)-major rows; reorder to PyTorch's
    # batch-major hs.view(-1, 2H) ordering (tiny tensor, negligible cost)
    tags = jnp.transpose(tags_pad.reshape(T, Bp, OUT_W), (1, 0, 2))[:B, :, :n_tag]
    return logits, tags.reshape(B * T, n_tag)


def make_params(key, vocab_size, word_dim, lstm_dim, n_tag, mlp_dim, n_class):
    ks = jax.random.split(key, 20)
    D, H, D2 = word_dim, lstm_dim, 2 * lstm_dim

    def init(k, shape, scale=0.1):
        return scale * jax.random.normal(k, shape, dtype=jnp.float32)

    return {
        "embedding": init(ks[0], (vocab_size, D)),
        # LSTM weights stored transposed (right-multiply form); gate order i,f,g,o
        "wih_f": init(ks[1], (D, 4 * H)), "whh_f": init(ks[2], (H, 4 * H)),
        "b_f": init(ks[3], (1, 4 * H)),
        "wih_b": init(ks[4], (D, 4 * H)), "whh_b": init(ks[5], (H, 4 * H)),
        "b_b": init(ks[6], (1, 4 * H)),
        # SelfAttention(2H -> H -> 1)
        "w_att1": init(ks[7], (D2, H)), "b_att1": init(ks[8], (1, H)),
        "w_att2": init(ks[9], (H, 1)), "b_att2": init(ks[10], (1, 1)),
        # heads
        "w_mlp": init(ks[11], (D2, mlp_dim)), "b_mlp": init(ks[12], (1, mlp_dim)),
        "w_cls": init(ks[13], (mlp_dim, n_class)), "b_cls": init(ks[14], (1, n_class)),
        "w_tag": init(ks[15], (D2, n_tag)), "b_tag": init(ks[16], (1, n_tag)),
    }


if __name__ == "__main__":
    B, T = 2, 8
    vocab_size, word_dim, lstm_dim = 50, 16, 16
    n_sentiment_tag, mlp_dim, n_class = 5, 32, 3

    key = jax.random.PRNGKey(0)
    k_tok, k_par = jax.random.split(key)
    params = make_params(k_par, vocab_size, word_dim, lstm_dim,
                         n_sentiment_tag, mlp_dim, n_class)

    x = jax.random.randint(k_tok, (B, T), 0, vocab_size, dtype=jnp.int32)
    x_len = jnp.array([8, 5], dtype=jnp.int32)
    x_mask = (jnp.arange(T)[None, :] < x_len[:, None]).astype(jnp.float32)

    logits, tags_logits = bilstm_classifier_forward(x, x_len, x_mask, params)
    jax.block_until_ready((logits, tags_logits))

    assert logits.shape == (B, n_class)
    assert tags_logits.shape == (B * T, n_sentiment_tag)
    assert bool(jnp.all(jnp.isfinite(logits)))
    assert bool(jnp.all(jnp.isfinite(tags_logits)))
    print("KERNEL_OK")
</pallas_src>

<mosaic_0001>
module attributes {stable_mosaic.version = 11 : i64} {
  func.func @_fused_kernel(%arg0: memref<8x8x16xbf16, #tpu.memory_space<vmem>>, %arg1: memref<8x8x16xbf16, #tpu.memory_space<vmem>>, %arg2: memref<8x8x1xf32, #tpu.memory_space<vmem>>, %arg3: memref<8x8x1xf32, #tpu.memory_space<vmem>>, %arg4: memref<8x8x1xf32, #tpu.memory_space<vmem>>, %arg5: memref<16x64xbf16, #tpu.memory_space<vmem>>, %arg6: memref<16x64xbf16, #tpu.memory_space<vmem>>, %arg7: memref<1x128xf32, #tpu.memory_space<vmem>>, %arg8: memref<32x128xbf16, #tpu.memory_space<vmem>>, %arg9: memref<16x16xbf16, #tpu.memory_space<vmem>>, %arg10: memref<16x16xbf16, #tpu.memory_space<vmem>>, %arg11: memref<1x16xf32, #tpu.memory_space<vmem>>, %arg12: memref<16x1xbf16, #tpu.memory_space<vmem>>, %arg13: memref<1x1xf32, #tpu.memory_space<vmem>>, %arg14: memref<16x32xbf16, #tpu.memory_space<vmem>>, %arg15: memref<16x32xbf16, #tpu.memory_space<vmem>>, %arg16: memref<1x32xf32, #tpu.memory_space<vmem>>, %arg17: memref<32x128xbf16, #tpu.memory_space<vmem>>, %arg18: memref<1x128xf32, #tpu.memory_space<vmem>>, %arg19: memref<16x128xbf16, #tpu.memory_space<vmem>>, %arg20: memref<16x128xbf16, #tpu.memory_space<vmem>>, %arg21: memref<1x128xf32, #tpu.memory_space<vmem>>, %arg22: memref<8x128xf32, #tpu.memory_space<vmem>>, %arg23: memref<64x128xf32, #tpu.memory_space<vmem>>, %arg24: memref<8x8x128xf32, #tpu.memory_space<vmem>>, %arg25: memref<8x8x16xf32, #tpu.memory_space<vmem>>, %arg26: memref<8x8x16xf32, #tpu.memory_space<vmem>>) attributes {dimension_semantics = [], scalar_prefetch = 0 : i64, scratch_operands = 3 : i64, tpu.core_type = #tpu.core_type<tc>} {
    %c0 = arith.constant 0 : index
    %c0_0 = arith.constant 0 : index
    %c0_1 = arith.constant 0 : index
    %0 = vector.load %arg0[%c0, %c0_0, %c0_1] : memref<8x8x16xbf16, #tpu.memory_space<vmem>>, vector<8x8x16xbf16>
    %1 = vector.shape_cast %0 : vector<8x8x16xbf16> to vector<64x16xbf16>
    %c0_2 = arith.constant 0 : index
    %c0_3 = arith.constant 0 : index
    %c0_4 = arith.constant 0 : index
    %2 = vector.load %arg1[%c0_2, %c0_3, %c0_4] : memref<8x8x16xbf16, #tpu.memory_space<vmem>>, vector<8x8x16xbf16>
    %3 = vector.shape_cast %2 : vector<8x8x16xbf16> to vector<64x16xbf16>
    %c0_5 = arith.constant 0 : index
    %c0_6 = arith.constant 0 : index
    %4 = vector.load %arg5[%c0_5, %c0_6] : memref<16x64xbf16, #tpu.memory_space<vmem>>, vector<16x64xbf16>
    %cst = arith.constant dense<0.000000e+00> : vector<64x64xf32>
    %5 = tpu.matmul %1, %4, %cst {dimension_numbers = #tpu.dot_dimension_numbers<[1], [0], [0], [1], [0, 0, 1, 1], [], []>} : vector<64x16xbf16>, vector<16x64xbf16>, vector<64x64xf32> -> vector<64x64xf32>
    %c0_7 = arith.constant 0 : index
    %c0_8 = arith.constant 0 : index
    %6 = vector.load %arg6[%c0_7, %c0_8] : memref<16x64xbf16, #tpu.memory_space<vmem>>, vector<16x64xbf16>
    %cst_9 = arith.constant dense<0.000000e+00> : vector<64x64xf32>
    %7 = tpu.matmul %3, %6, %cst_9 {dimension_numbers = #tpu.dot_dimension_numbers<[1], [0], [0], [1], [0, 0, 1, 1], [], []>} : vector<64x16xbf16>, vector<16x64xbf16>, vector<64x64xf32> -> vector<64x64xf32>
    %8 = tpu.concatenate %5, %7 in 1 : vector<64x64xf32>, vector<64x64xf32> -> vector<64x128xf32>
    %c0_10 = arith.constant 0 : index
    %c0_11 = arith.constant 0 : index
    %9 = vector.load %arg7[%c0_10, %c0_11] : memref<1x128xf32, #tpu.memory_space<vmem>>, vector<1x128xf32>
    %10 = vector.broadcast %9 : vector<1x128xf32> to vector<64x128xf32>
    %11 = arith.addf %8, %10 : vector<64x128xf32>
    %12 = vector.shape_cast %11 : vector<64x128xf32> to vector<8x8x128xf32>
    %c0_12 = arith.constant 0 : index
    %c0_13 = arith.constant 0 : index
    %c0_14 = arith.constant 0 : index
    %13 = vector.load %arg24[%c0_12, %c0_13, %c0_14] : memref<8x8x128xf32, #tpu.memory_space<vmem>>, vector<8x8x128xf32>
    tpu.vector_store %arg24[%c0_12, %c0_13, %c0_14], %12 {strides = array<i32>} : memref<8x8x128xf32, #tpu.memory_space<vmem>>, vector<8x8x128xf32>,
    %c0_15 = arith.constant 0 : index
    %c0_16 = arith.constant 0 : index
    %14 = vector.load %arg8[%c0_15, %c0_16] : memref<32x128xbf16, #tpu.memory_space<vmem>>, vector<32x128xbf16>
    %cst_17 = arith.constant 0.000000e+00 : f32
    %15 = vector.broadcast %cst_17 : f32 to vector<8x16xf32>
    %c0_i32 = arith.constant 0 : i32
    %16 = tpu.concatenate %15, %15 in 1 : vector<8x16xf32>, vector<8x16xf32> -> vector<8x32xf32>
    %17 = arith.truncf %16 : vector<8x32xf32> to vector<8x32xbf16>
    %18 = arith.index_cast %c0_i32 : i32 to index
    %c0_18 = arith.constant 0 : index
    %c0_19 = arith.constant 0 : index
    %19 = vector.load %arg24[%18, %c0_18, %c0_19] : memref<8x8x128xf32, #tpu.memory_space<vmem>>, vector<1x8x128xf32>
    %20 = vector.shape_cast %19 : vector<1x8x128xf32> to vector<8x128xf32>
    %cst_20 = arith.constant dense<0.000000e+00> : vector<8x128xf32>
    %21 = tpu.matmul %17, %14, %cst_20 {dimension_numbers = #tpu.dot_dimension_numbers<[1], [0], [0], [1], [0, 0, 1, 1], [], []>} : vector<8x32xbf16>, vector<32x128xbf16>, vector<8x128xf32> -> vector<8x128xf32>
    %22 = arith.addf %20, %21 : vector<8x128xf32>
    %23 = arith.negf %22 : vector<8x128xf32>
    %24 = math.exp %23 : vector<8x128xf32>
    %cst_21 = arith.constant 1.000000e+00 : f32
    %25 = vector.broadcast %cst_21 : f32 to vector<8x128xf32>
    %26 = arith.addf %25, %24 : vector<8x128xf32>
    %27 = arith.divf %25, %26 : vector<8x128xf32>
    %28 = math.tanh %22 : vector<8x128xf32>
    %29 = vector.extract_strided_slice %27 {offsets = [0, 16], sizes = [8, 16], strides = [1, 1]} : vector<8x128xf32> to vector<8x16xf32>
    %30 = arith.mulf %29, %15 : vector<8x16xf32>
    %31 = vector.extract_strided_slice %27 {offsets = [0, 0], sizes = [8, 16], strides = [1, 1]} : vector<8x128xf32> to vector<8x16xf32>
    %32 = vector.extract_strided_slice %28 {offsets = [0, 32], sizes = [8, 16], strides = [1, 1]} : vector<8x128xf32> to vector<8x16xf32>
    %33 = arith.mulf %31, %32 : vector<8x16xf32>
    %34 = arith.addf %30, %33 : vector<8x16xf32>
    %35 = vector.extract_strided_slice %27 {offsets = [0, 80], sizes = [8, 16], strides = [1, 1]} : vector<8x128xf32> to vector<8x16xf32>
    %36 = arith.mulf %35, %15 : vector<8x16xf32>
    %37 = vector.extract_strided_slice %27 {offsets = [0, 64], sizes = [8, 16], strides = [1, 1]} : vector<8x128xf32> to vector<8x16xf32>
    %38 = vector.extract_strided_slice %28 {offsets = [0, 96], sizes = [8, 16], strides = [1, 1]} : vector<8x128xf32> to vector<8x16xf32>
    %39 = arith.mulf %37, %38 : vector<8x16xf32>
    %40 = arith.addf %36, %39 : vector<8x16xf32>
    %41 = vector.extract_strided_slice %27 {offsets = [0, 48], sizes = [8, 16], strides = [1, 1]} : vector<8x128xf32> to vector<8x16xf32>
    %42 = math.tanh %34 : vector<8x16xf32>
    %43 = arith.mulf %41, %42 : vector<8x16xf32>
    %44 = vector.extract_strided_slice %27 {offsets = [0, 112], sizes = [8, 16], strides = [1, 1]} : vector<8x128xf32> to vector<8x16xf32>
    %45 = math.tanh %40 : vector<8x16xf32>
    %46 = arith.mulf %44, %45 : vector<8x16xf32>
    %47 = arith.index_cast %c0_i32 : i32 to index
    %c0_22 = arith.constant 0 : index
    %c0_23 = arith.constant 0 : index
    %48 = vector.load %arg2[%47, %c0_22, %c0_23] : memref<8x8x1xf32, #tpu.memory_space<vmem>>, vector<1x8x1xf32>
    %49 = vector.shape_cast %48 : vector<1x8x1xf32> to vector<8x1xf32>
    %50 = arith.index_cast %c0_i32 : i32 to index
    %c0_24 = arith.constant 0 : index
    %c0_25 = arith.constant 0 : index
    %51 = vector.load %arg3[%50, %c0_24, %c0_25] : memref<8x8x1xf32, #tpu.memory_space<vmem>>, vector<1x8x1xf32>
    %52 = vector.shape_cast %51 : vector<1x8x1xf32> to vector<8x1xf32>
    %53 = vector.broadcast %49 : vector<8x1xf32> to vector<8x16xf32>
    %54 = arith.mulf %53, %43 : vector<8x16xf32>
    %55 = vector.broadcast %52 : vector<8x1xf32> to vector<8x16xf32>
    %56 = arith.mulf %55, %46 : vector<8x16xf32>
    %57 = arith.index_cast %c0_i32 : i32 to index
    %c0_26 = arith.constant 0 : index
    %c0_27 = arith.constant 0 : index
    %58 = vector.load %arg25[%57, %c0_26, %c0_27] : memref<8x8x16xf32, #tpu.memory_space<vmem>>, vector<1x8x16xf32>
    %59 = vector.shape_cast %58 : vector<1x8x16xf32> to vector<8x16xf32>
    %60 = vector.shape_cast %54 : vector<8x16xf32> to vector<1x8x16xf32>
    tpu.vector_store %arg25[%57, %c0_26, %c0_27], %60 {strides = array<i32>} : memref<8x8x16xf32, #tpu.memory_space<vmem>>, vector<1x8x16xf32>,
    %c7_i32 = arith.constant 7 : i32
    %61 = arith.subi %c7_i32, %c0_i32 : i32
    %62 = arith.index_cast %61 : i32 to index
    %c0_28 = arith.constant 0 : index
    %c0_29 = arith.constant 0 : index
    %63 = vector.load %arg26[%62, %c0_28, %c0_29] : memref<8x8x16xf32, #tpu.memory_space<vmem>>, vector<1x8x16xf32>
    %64 = vector.shape_cast %63 : vector<1x8x16xf32> to vector<8x16xf32>
    %65 = vector.shape_cast %56 : vector<8x16xf32> to vector<1x8x16xf32>
    tpu.vector_store %arg26[%62, %c0_28, %c0_29], %65 {strides = array<i32>} : memref<8x8x16xf32, #tpu.memory_space<vmem>>, vector<1x8x16xf32>,
    %cst_30 = arith.constant 1.000000e+00 : f32
    %66 = vector.broadcast %cst_30 : f32 to vector<8x1xf32>
    %67 = arith.subf %66, %49 : vector<8x1xf32>
    %68 = vector.broadcast %67 : vector<8x1xf32> to vector<8x16xf32>
    %69 = arith.mulf %68, %15 : vector<8x16xf32>
    %70 = arith.addf %54, %69 : vector<8x16xf32>
    %cst_31 = arith.constant 1.000000e+00 : f32
    %71 = vector.broadcast %cst_31 : f32 to vector<8x1xf32>
    %72 = arith.subf %71, %52 : vector<8x1xf32>
    %73 = vector.broadcast %72 : vector<8x1xf32> to vector<8x16xf32>
    %74 = arith.mulf %73, %15 : vector<8x16xf32>
    %75 = arith.addf %56, %74 : vector<8x16xf32>
    %76 = vector.broadcast %49 : vector<8x1xf32> to vector<8x16xf32>
    %77 = arith.mulf %76, %34 : vector<8x16xf32>
    %cst_32 = arith.constant 1.000000e+00 : f32
    %78 = vector.broadcast %cst_32 : f32 to vector<8x1xf32>
    %79 = arith.subf %78, %49 : vector<8x1xf32>
    %80 = vector.broadcast %79 : vector<8x1xf32> to vector<8x16xf32>
    %81 = arith.mulf %80, %15 : vector<8x16xf32>
    %82 = arith.addf %77, %81 : vector<8x16xf32>
    %83 = vector.broadcast %52 : vector<8x1xf32> to vector<8x16xf32>
    %84 = arith.mulf %83, %40 : vector<8x16xf32>
    %cst_33 = arith.constant 1.000000e+00 : f32
    %85 = vector.broadcast %cst_33 : f32 to vector<8x1xf32>
    %86 = arith.subf %85, %52 : vector<8x1xf32>
    %87 = vector.broadcast %86 : vector<8x1xf32> to vector<8x16xf32>
    %88 = arith.mulf %87, %15 : vector<8x16xf32>
    %89 = arith.addf %84, %88 : vector<8x16xf32>
    %c1_i32 = arith.constant 1 : i32
    %90 = tpu.concatenate %70, %75 in 1 : vector<8x16xf32>, vector<8x16xf32> -> vector<8x32xf32>
    %91 = arith.truncf %90 : vector<8x32xf32> to vector<8x32xbf16>
    %92 = arith.index_cast %c1_i32 : i32 to index
    %c0_34 = arith.constant 0 : index
    %c0_35 = arith.constant 0 : index
    %93 = vector.load %arg24[%92, %c0_34, %c0_35] : memref<8x8x128xf32, #tpu.memory_space<vmem>>, vector<1x8x128xf32>
    %94 = vector.shape_cast %93 : vector<1x8x128xf32> to vector<8x128xf32>
    %cst_36 = arith.constant dense<0.000000e+00> : vector<8x128xf32>
    %95 = tpu.matmul %91, %14, %cst_36 {dimension_numbers = #tpu.dot_dimension_numbers<[1], [0], [0], [1], [0, 0, 1, 1], [], []>} : vector<8x32xbf16>, vector<32x128xbf16>, vector<8x128xf32> -> vector<8x128xf32>
    %96 = arith.addf %94, %95 : vector<8x128xf32>
    %97 = arith.negf %96 : vector<8x128xf32>
    %98 = math.exp %97 : vector<8x128xf32>
    %cst_37 = arith.constant 1.000000e+00 : f32
    %99 = vector.broadcast %cst_37 : f32 to vector<8x128xf32>
    %100 = arith.addf %99, %98 : vector<8x128xf32>
    %101 = arith.divf %99, %100 : vector<8x128xf32>
    %102 = math.tanh %96 : vector<8x128xf32>
    %103 = vector.extract_strided_slice %101 {offsets = [0, 16], sizes = [8, 16], strides = [1, 1]} : vector<8x128xf32> to vector<8x16xf32>
    %104 = arith.mulf %103, %82 : vector<8x16xf32>
    %105 = vector.extract_strided_slice %101 {offsets = [0, 0], sizes = [8, 16], strides = [1, 1]} : vector<8x128xf32> to vector<8x16xf32>
    %106 = vector.extract_strided_slice %102 {offsets = [0, 32], sizes = [8, 16], strides = [1, 1]} : vector<8x128xf32> to vector<8x16xf32>
    %107 = arith.mulf %105, %106 : vector<8x16xf32>
    %108 = arith.addf %104, %107 : vector<8x16xf32>
    %109 = vector.extract_strided_slice %101 {offsets = [0, 80], sizes = [8, 16], strides = [1, 1]} : vector<8x128xf32> to vector<8x16xf32>
    %110 = arith.mulf %109, %89 : vector<8x16xf32>
    %111 = vector.extract_strided_slice %101 {offsets = [0, 64], sizes = [8, 16], strides = [1, 1]} : vector<8x128xf32> to vector<8x16xf32>
    %112 = vector.extract_strided_slice %102 {offsets = [0, 96], sizes = [8, 16], strides = [1, 1]} : vector<8x128xf32> to vector<8x16xf32>
    %113 = arith.mulf %111, %112 : vector<8x16xf32>
    %114 = arith.addf %110, %113 : vector<8x16xf32>
    %115 = vector.extract_strided_slice %101 {offsets = [0, 48], sizes = [8, 16], strides = [1, 1]} : vector<8x128xf32> to vector<8x16xf32>
    %116 = math.tanh %108 : vector<8x16xf32>
    %117 = arith.mulf %115, %116 : vector<8x16xf32>
    %118 = vector.extract_strided_slice %101 {offsets = [0, 112], sizes = [8, 16], strides = [1, 1]} : vector<8x128xf32> to vector<8x16xf32>
    %119 = math.tanh %114 : vector<8x16xf32>
    %120 = arith.mulf %118, %119 : vector<8x16xf32>
    %121 = arith.index_cast %c1_i32 : i32 to index
    %c0_38 = arith.constant 0 : index
    %c0_39 = arith.constant 0 : index
    %122 = vector.load %arg2[%121, %c0_38, %c0_39] : memref<8x8x1xf32, #tpu.memory_space<vmem>>, vector<1x8x1xf32>
    %123 = vector.shape_cast %122 : vector<1x8x1xf32> to vector<8x1xf32>
    %124 = arith.index_cast %c1_i32 : i32 to index
    %c0_40 = arith.constant 0 : index
    %c0_41 = arith.constant 0 : index
    %125 = vector.load %arg3[%124, %c0_40, %c0_41] : memref<8x8x1xf32, #tpu.memory_space<vmem>>, vector<1x8x1xf32>
    %126 = vector.shape_cast %125 : vector<1x8x1xf32> to vector<8x1xf32>
    %127 = vector.broadcast %123 : vector<8x1xf32> to vector<8x16xf32>
    %128 = arith.mulf %127, %117 : vector<8x16xf32>
    %129 = vector.broadcast %126 : vector<8x1xf32> to vector<8x16xf32>
    %130 = arith.mulf %129, %120 : vector<8x16xf32>
    %131 = arith.index_cast %c1_i32 : i32 to index
    %c0_42 = arith.constant 0 : index
    %c0_43 = arith.constant 0 : index
    %132 = vector.load %arg25[%131, %c0_42, %c0_43] : memref<8x8x16xf32, #tpu.memory_space<vmem>>, vector<1x8x16xf32>
    %133 = vector.shape_cast %132 : vector<1x8x16xf32> to vector<8x16xf32>
    %134 = vector.shape_cast %128 : vector<8x16xf32> to vector<1x8x16xf32>
    tpu.vector_store %arg25[%131, %c0_42, %c0_43], %134 {strides = array<i32>} : memref<8x8x16xf32, #tpu.memory_space<vmem>>, vector<1x8x16xf32>,
    %c7_i32_44 = arith.constant 7 : i32
    %135 = arith.subi %c7_i32_44, %c1_i32 : i32
    %136 = arith.index_cast %135 : i32 to index
    %c0_45 = arith.constant 0 : index
    %c0_46 = arith.constant 0 : index
    %137 = vector.load %arg26[%136, %c0_45, %c0_46] : memref<8x8x16xf32, #tpu.memory_space<vmem>>, vector<1x8x16xf32>
    %138 = vector.shape_cast %137 : vector<1x8x16xf32> to vector<8x16xf32>
    %139 = vector.shape_cast %130 : vector<8x16xf32> to vector<1x8x16xf32>
    tpu.vector_store %arg26[%136, %c0_45, %c0_46], %139 {strides = array<i32>} : memref<8x8x16xf32, #tpu.memory_space<vmem>>, vector<1x8x16xf32>,
    %cst_47 = arith.constant 1.000000e+00 : f32
    %140 = vector.broadcast %cst_47 : f32 to vector<8x1xf32>
    %141 = arith.subf %140, %123 : vector<8x1xf32>
    %142 = vector.broadcast %141 : vector<8x1xf32> to vector<8x16xf32>
    %143 = arith.mulf %142, %70 : vector<8x16xf32>
    %144 = arith.addf %128, %143 : vector<8x16xf32>
    %cst_48 = arith.constant 1.000000e+00 : f32
    %145 = vector.broadcast %cst_48 : f32 to vector<8x1xf32>
    %146 = arith.subf %145, %126 : vector<8x1xf32>
    %147 = vector.broadcast %146 : vector<8x1xf32> to vector<8x16xf32>
    %148 = arith.mulf %147, %75 : vector<8x16xf32>
    %149 = arith.addf %130, %148 : vector<8x16xf32>
    %150 = vector.broadcast %123 : vector<8x1xf32> to vector<8x16xf32>
    %151 = arith.mulf %150, %108 : vector<8x16xf32>
    %cst_49 = arith.constant 1.000000e+00 : f32
    %152 = vector.broadcast %cst_49 : f32 to vector<8x1xf32>
    %153 = arith.subf %152, %123 : vector<8x1xf32>
    %154 = vector.broadcast %153 : vector<8x1xf32> to vector<8x16xf32>
    %155 = arith.mulf %154, %82 : vector<8x16xf32>
    %156 = arith.addf %151, %155 : vector<8x16xf32>
    %157 = vector.broadcast %126 : vector<8x1xf32> to vector<8x16xf32>
    %158 = arith.mulf %157, %114 : vector<8x16xf32>
    %cst_50 = arith.constant 1.000000e+00 : f32
    %159 = vector.broadcast %cst_50 : f32 to vector<8x1xf32>
    %160 = arith.subf %159, %126 : vector<8x1xf32>
    %161 = vector.broadcast %160 : vector<8x1xf32> to vector<8x16xf32>
    %162 = arith.mulf %161, %89 : vector<8x16xf32>
    %163 = arith.addf %158, %162 : vector<8x16xf32>
    %c2_i32 = arith.constant 2 : i32
    %164 = tpu.concatenate %144, %149 in 1 : vector<8x16xf32>, vector<8x16xf32> -> vector<8x32xf32>
    %165 = arith.truncf %164 : vector<8x32xf32> to vector<8x32xbf16>
    %166 = arith.index_cast %c2_i32 : i32 to index
    %c0_51 = arith.constant 0 : index
    %c0_52 = arith.constant 0 : index
    %167 = vector.load %arg24[%166, %c0_51, %c0_52] : memref<8x8x128xf32, #tpu.memory_space<vmem>>, vector<1x8x128xf32>
    %168 = vector.shape_cast %167 : vector<1x8x128xf32> to vector<8x128xf32>
    %cst_53 = arith.constant dense<0.000000e+00> : vector<8x128xf32>
    %169 = tpu.matmul %165, %14, %cst_53 {dimension_numbers = #tpu.dot_dimension_numbers<[1], [0], [0], [1], [0, 0, 1, 1], [], []>} : vector<8x32xbf16>, vector<32x128xbf16>, vector<8x128xf32> -> vector<8x128xf32>
    %170 = arith.addf %168, %169 : vector<8x128xf32>
    %171 = arith.negf %170 : vector<8x128xf32>
    %172 = math.exp %171 : vector<8x128xf32>
    %cst_54 = arith.constant 1.000000e+00 : f32
    %173 = vector.broadcast %cst_54 : f32 to vector<8x128xf32>
    %174 = arith.addf %173, %172 : vector<8x128xf32>
    %175 = arith.divf %173, %174 : vector<8x128xf32>
    %176 = math.tanh %170 : vector<8x128xf32>
    %177 = vector.extract_strided_slice %175 {offsets = [0, 16], sizes = [8, 16], strides = [1, 1]} : vector<8x128xf32> to vector<8x16xf32>
    %178 = arith.mulf %177, %156 : vector<8x16xf32>
    %179 = vector.extract_strided_slice %175 {offsets = [0, 0], sizes = [8, 16], strides = [1, 1]} : vector<8x128xf32> to vector<8x16xf32>
    %180 = vector.extract_strided_slice %176 {offsets = [0, 32], sizes = [8, 16], strides = [1, 1]} : vector<8x128xf32> to vector<8x16xf32>
    %181 = arith.mulf %179, %180 : vector<8x16xf32>
    %182 = arith.addf %178, %181 : vector<8x16xf32>
    %183 = vector.extract_strided_slice %175 {offsets = [0, 80], sizes = [8, 16], strides = [1, 1]} : vector<8x128xf32> to vector<8x16xf32>
    %184 = arith.mulf %183, %163 : vector<8x16xf32>
    %185 = vector.extract_strided_slice %175 {offsets = [0, 64], sizes = [8, 16], strides = [1, 1]} : vector<8x128xf32> to vector<8x16xf32>
    %186 = vector.extract_strided_slice %176 {offsets = [0, 96], sizes = [8, 16], strides = [1, 1]} : vector<8x128xf32> to vector<8x16xf32>
    %187 = arith.mulf %185, %186 : vector<8x16xf32>
    %188 = arith.addf %184, %187 : vector<8x16xf32>
    %189 = vector.extract_strided_slice %175 {offsets = [0, 48], sizes = [8, 16], strides = [1, 1]} : vector<8x128xf32> to vector<8x16xf32>
    %190 = math.tanh %182 : vector<8x16xf32>
    %191 = arith.mulf %189, %190 : vector<8x16xf32>
    %192 = vector.extract_strided_slice %175 {offsets = [0, 112], sizes = [8, 16], strides = [1, 1]} : vector<8x128xf32> to vector<8x16xf32>
    %193 = math.tanh %188 : vector<8x16xf32>
    %194 = arith.mulf %192, %193 : vector<8x16xf32>
    %195 = arith.index_cast %c2_i32 : i32 to index
    %c0_55 = arith.constant 0 : index
    %c0_56 = arith.constant 0 : index
    %196 = vector.load %arg2[%195, %c0_55, %c0_56] : memref<8x8x1xf32, #tpu.memory_space<vmem>>, vector<1x8x1xf32>
    %197 = vector.shape_cast %196 : vector<1x8x1xf32> to vector<8x1xf32>
    %198 = arith.index_cast %c2_i32 : i32 to index
    %c0_57 = arith.constant 0 : index
    %c0_58 = arith.constant 0 : index
    %199 = vector.load %arg3[%198, %c0_57, %c0_58] : memref<8x8x1xf32, #tpu.memory_space<vmem>>, vector<1x8x1xf32>
    %200 = vector.shape_cast %199 : vector<1x8x1xf32> to vector<8x1xf32>
    %201 = vector.broadcast %197 : vector<8x1xf32> to vector<8x16xf32>
    %202 = arith.mulf %201, %191 : vector<8x16xf32>
    %203 = vector.broadcast %200 : vector<8x1xf32> to vector<8x16xf32>
    %204 = arith.mulf %203, %194 : vector<8x16xf32>
    %205 = arith.index_cast %c2_i32 : i32 to index
    %c0_59 = arith.constant 0 : index
    %c0_60 = arith.constant 0 : index
    %206 = vector.load %arg25[%205, %c0_59, %c0_60] : memref<8x8x16xf32, #tpu.memory_space<vmem>>, vector<1x8x16xf32>
    %207 = vector.shape_cast %206 : vector<1x8x16xf32> to vector<8x16xf32>
    %208 = vector.shape_cast %202 : vector<8x16xf32> to vector<1x8x16xf32>
    tpu.vector_store %arg25[%205, %c0_59, %c0_60], %208 {strides = array<i32>} : memref<8x8x16xf32, #tpu.memory_space<vmem>>, vector<1x8x16xf32>,
    %c7_i32_61 = arith.constant 7 : i32
    %209 = arith.subi %c7_i32_61, %c2_i32 : i32
    %210 = arith.index_cast %209 : i32 to index
    %c0_62 = arith.constant 0 : index
    %c0_63 = arith.constant 0 : index
    %211 = vector.load %arg26[%210, %c0_62, %c0_63] : memref<8x8x16xf32, #tpu.memory_space<vmem>>, vector<1x8x16xf32>
    %212 = vector.shape_cast %211 : vector<1x8x16xf32> to vector<8x16xf32>
    %213 = vector.shape_cast %204 : vector<8x16xf32> to vector<1x8x16xf32>
    tpu.vector_store %arg26[%210, %c0_62, %c0_63], %213 {strides = array<i32>} : memref<8x8x16xf32, #tpu.memory_space<vmem>>, vector<1x8x16xf32>,
    %cst_64 = arith.constant 1.000000e+00 : f32
    %214 = vector.broadcast %cst_64 : f32 to vector<8x1xf32>
    %215 = arith.subf %214, %197 : vector<8x1xf32>
    %216 = vector.broadcast %215 : vector<8x1xf32> to vector<8x16xf32>
    %217 = arith.mulf %216, %144 : vector<8x16xf32>
    %218 = arith.addf %202, %217 : vector<8x16xf32>
    %cst_65 = arith.constant 1.000000e+00 : f32
    %219 = vector.broadcast %cst_65 : f32 to vector<8x1xf32>
    %220 = arith.subf %219, %200 : vector<8x1xf32>
    %221 = vector.broadcast %220 : vector<8x1xf32> to vector<8x16xf32>
    %222 = arith.mulf %221, %149 : vector<8x16xf32>
    %223 = arith.addf %204, %222 : vector<8x16xf32>
    %224 = vector.broadcast %197 : vector<8x1xf32> to vector<8x16xf32>
    %225 = arith.mulf %224, %182 : vector<8x16xf32>
    %cst_66 = arith.constant 1.000000e+00 : f32
    %226 = vector.broadcast %cst_66 : f32 to vector<8x1xf32>
    %227 = arith.subf %226, %197 : vector<8x1xf32>
    %228 = vector.broadcast %227 : vector<8x1xf32> to vector<8x16xf32>
    %229 = arith.mulf %228, %156 : vector<8x16xf32>
    %230 = arith.addf %225, %229 : vector<8x16xf32>
    %231 = vector.broadcast %200 : vector<8x1xf32> to vector<8x16xf32>
    %232 = arith.mulf %231, %188 : vector<8x16xf32>
    %cst_67 = arith.constant 1.000000e+00 : f32
    %233 = vector.broadcast %cst_67 : f32 to vector<8x1xf32>
    %234 = arith.subf %233, %200 : vector<8x1xf32>
    %235 = vector.broadcast %234 : vector<8x1xf32> to vector<8x16xf32>
    %236 = arith.mulf %235, %163 : vector<8x16xf32>
    %237 = arith.addf %232, %236 : vector<8x16xf32>
    %c3_i32 = arith.constant 3 : i32
    %238 = tpu.concatenate %218, %223 in 1 : vector<8x16xf32>, vector<8x16xf32> -> vector<8x32xf32>
    %239 = arith.truncf %238 : vector<8x32xf32> to vector<8x32xbf16>
    %240 = arith.index_cast %c3_i32 : i32 to index
    %c0_68 = arith.constant 0 : index
    %c0_69 = arith.constant 0 : index
    %241 = vector.load %arg24[%240, %c0_68, %c0_69] : memref<8x8x128xf32, #tpu.memory_space<vmem>>, vector<1x8x128xf32>
    %242 = vector.shape_cast %241 : vector<1x8x128xf32> to vector<8x128xf32>
    %cst_70 = arith.constant dense<0.000000e+00> : vector<8x128xf32>
    %243 = tpu.matmul %239, %14, %cst_70 {dimension_numbers = #tpu.dot_dimension_numbers<[1], [0], [0], [1], [0, 0, 1, 1], [], []>} : vector<8x32xbf16>, vector<32x128xbf16>, vector<8x128xf32> -> vector<8x128xf32>
    %244 = arith.addf %242, %243 : vector<8x128xf32>
    %245 = arith.negf %244 : vector<8x128xf32>
    %246 = math.exp %245 : vector<8x128xf32>
    %cst_71 = arith.constant 1.000000e+00 : f32
    %247 = vector.broadcast %cst_71 : f32 to vector<8x128xf32>
    %248 = arith.addf %247, %246 : vector<8x128xf32>
    %249 = arith.divf %247, %248 : vector<8x128xf32>
    %250 = math.tanh %244 : vector<8x128xf32>
    %251 = vector.extract_strided_slice %249 {offsets = [0, 16], sizes = [8, 16], strides = [1, 1]} : vector<8x128xf32> to vector<8x16xf32>
    %252 = arith.mulf %251, %230 : vector<8x16xf32>
    %253 = vector.extract_strided_slice %249 {offsets = [0, 0], sizes = [8, 16], strides = [1, 1]} : vector<8x128xf32> to vector<8x16xf32>
    %254 = vector.extract_strided_slice %250 {offsets = [0, 32], sizes = [8, 16], strides = [1, 1]} : vector<8x128xf32> to vector<8x16xf32>
    %255 = arith.mulf %253, %254 : vector<8x16xf32>
    %256 = arith.addf %252, %255 : vector<8x16xf32>
    %257 = vector.extract_strided_slice %249 {offsets = [0, 80], sizes = [8, 16], strides = [1, 1]} : vector<8x128xf32> to vector<8x16xf32>
    %258 = arith.mulf %257, %237 : vector<8x16xf32>
    %259 = vector.extract_strided_slice %249 {offsets = [0, 64], sizes = [8, 16], strides = [1, 1]} : vector<8x128xf32> to vector<8x16xf32>
    %260 = vector.extract_strided_slice %250 {offsets = [0, 96], sizes = [8, 16], strides = [1, 1]} : vector<8x128xf32> to vector<8x16xf32>
    %261 = arith.mulf %259, %260 : vector<8x16xf32>
    %262 = arith.addf %258, %261 : vector<8x16xf32>
    %263 = vector.extract_strided_slice %249 {offsets = [0, 48], sizes = [8, 16], strides = [1, 1]} : vector<8x128xf32> to vector<8x16xf32>
    %264 = math.tanh %256 : vector<8x16xf32>
    %265 = arith.mulf %263, %264 : vector<8x16xf32>
    %266 = vector.extract_strided_slice %249 {offsets = [0, 112], sizes = [8, 16], strides = [1, 1]} : vector<8x128xf32> to vector<8x16xf32>
    %267 = math.tanh %262 : vector<8x16xf32>
    %268 = arith.mulf %266, %267 : vector<8x16xf32>
    %269 = arith.index_cast %c3_i32 : i32 to index
    %c0_72 = arith.constant 0 : index
    %c0_73 = arith.constant 0 : index
    %270 = vector.load %arg2[%269, %c0_72, %c0_73] : memref<8x8x1xf32, #tpu.memory_space<vmem>>, vector<1x8x1xf32>
    %271 = vector.shape_cast %270 : vector<1x8x1xf32> to vector<8x1xf32>
    %272 = arith.index_cast %c3_i32 : i32 to index
    %c0_74 = arith.constant 0 : index
    %c0_75 = arith.constant 0 : index
    %273 = vector.load %arg3[%272, %c0_74, %c0_75] : memref<8x8x1xf32, #tpu.memory_space<vmem>>, vector<1x8x1xf32>
    %274 = vector.shape_cast %273 : vector<1x8x1xf32> to vector<8x1xf32>
    %275 = vector.broadcast %271 : vector<8x1xf32> to vector<8x16xf32>
    %276 = arith.mulf %275, %265 : vector<8x16xf32>
    %277 = vector.broadcast %274 : vector<8x1xf32> to vector<8x16xf32>
    %278 = arith.mulf %277, %268 : vector<8x16xf32>
    %279 = arith.index_cast %c3_i32 : i32 to index
    %c0_76 = arith.constant 0 : index
    %c0_77 = arith.constant 0 : index
    %280 = vector.load %arg25[%279, %c0_76, %c0_77] : memref<8x8x16xf32, #tpu.memory_space<vmem>>, vector<1x8x16xf32>
    %281 = vector.shape_cast %280 : vector<1x8x16xf32> to vector<8x16xf32>
    %282 = vector.shape_cast %276 : vector<8x16xf32> to vector<1x8x16xf32>
    tpu.vector_store %arg25[%279, %c0_76, %c0_77], %282 {strides = array<i32>} : memref<8x8x16xf32, #tpu.memory_space<vmem>>, vector<1x8x16xf32>,
    %c7_i32_78 = arith.constant 7 : i32
    %283 = arith.subi %c7_i32_78, %c3_i32 : i32
    %284 = arith.index_cast %283 : i32 to index
    %c0_79 = arith.constant 0 : index
    %c0_80 = arith.constant 0 : index
    %285 = vector.load %arg26[%284, %c0_79, %c0_80] : memref<8x8x16xf32, #tpu.memory_space<vmem>>, vector<1x8x16xf32>
    %286 = vector.shape_cast %285 : vector<1x8x16xf32> to vector<8x16xf32>
    %287 = vector.shape_cast %278 : vector<8x16xf32> to vector<1x8x16xf32>
    tpu.vector_store %arg26[%284, %c0_79, %c0_80], %287 {strides = array<i32>} : memref<8x8x16xf32, #tpu.memory_space<vmem>>, vector<1x8x16xf32>,
    %cst_81 = arith.constant 1.000000e+00 : f32
    %288 = vector.broadcast %cst_81 : f32 to vector<8x1xf32>
    %289 = arith.subf %288, %271 : vector<8x1xf32>
    %290 = vector.broadcast %289 : vector<8x1xf32> to vector<8x16xf32>
    %291 = arith.mulf %290, %218 : vector<8x16xf32>
    %292 = arith.addf %276, %291 : vector<8x16xf32>
    %cst_82 = arith.constant 1.000000e+00 : f32
    %293 = vector.broadcast %cst_82 : f32 to vector<8x1xf32>
    %294 = arith.subf %293, %274 : vector<8x1xf32>
    %295 = vector.broadcast %294 : vector<8x1xf32> to vector<8x16xf32>
    %296 = arith.mulf %295, %223 : vector<8x16xf32>
    %297 = arith.addf %278, %296 : vector<8x16xf32>
    %298 = vector.broadcast %271 : vector<8x1xf32> to vector<8x16xf32>
    %299 = arith.mulf %298, %256 : vector<8x16xf32>
    %cst_83 = arith.constant 1.000000e+00 : f32
    %300 = vector.broadcast %cst_83 : f32 to vector<8x1xf32>
    %301 = arith.subf %300, %271 : vector<8x1xf32>
    %302 = vector.broadcast %301 : vector<8x1xf32> to vector<8x16xf32>
    %303 = arith.mulf %302, %230 : vector<8x16xf32>
    %304 = arith.addf %299, %303 : vector<8x16xf32>
    %305 = vector.broadcast %274 : vector<8x1xf32> to vector<8x16xf32>
    %306 = arith.mulf %305, %262 : vector<8x16xf32>
    %cst_84 = arith.constant 1.000000e+00 : f32
    %307 = vector.broadcast %cst_84 : f32 to vector<8x1xf32>
    %308 = arith.subf %307, %274 : vector<8x1xf32>
    %309 = vector.broadcast %308 : vector<8x1xf32> to vector<8x16xf32>
    %310 = arith.mulf %309, %237 : vector<8x16xf32>
    %311 = arith.addf %306, %310 : vector<8x16xf32>
    %c4_i32 = arith.constant 4 : i32
    %312 = tpu.concatenate %292, %297 in 1 : vector<8x16xf32>, vector<8x16xf32> -> vector<8x32xf32>
    %313 = arith.truncf %312 : vector<8x32xf32> to vector<8x32xbf16>
    %314 = arith.index_cast %c4_i32 : i32 to index
    %c0_85 = arith.constant 0 : index
    %c0_86 = arith.constant 0 : index
    %315 = vector.load %arg24[%314, %c0_85, %c0_86] : memref<8x8x128xf32, #tpu.memory_space<vmem>>, vector<1x8x128xf32>
    %316 = vector.shape_cast %315 : vector<1x8x128xf32> to vector<8x128xf32>
    %cst_87 = arith.constant dense<0.000000e+00> : vector<8x128xf32>
    %317 = tpu.matmul %313, %14, %cst_87 {dimension_numbers = #tpu.dot_dimension_numbers<[1], [0], [0], [1], [0, 0, 1, 1], [], []>} : vector<8x32xbf16>, vector<32x128xbf16>, vector<8x128xf32> -> vector<8x128xf32>
    %318 = arith.addf %316, %317 : vector<8x128xf32>
    %319 = arith.negf %318 : vector<8x128xf32>
    %320 = math.exp %319 : vector<8x128xf32>
    %cst_88 = arith.constant 1.000000e+00 : f32
    %321 = vector.broadcast %cst_88 : f32 to vector<8x128xf32>
    %322 = arith.addf %321, %320 : vector<8x128xf32>
    %323 = arith.divf %321, %322 : vector<8x128xf32>
    %324 = math.tanh %318 : vector<8x128xf32>
    %325 = vector.extract_strided_slice %323 {offsets = [0, 16], sizes = [8, 16], strides = [1, 1]} : vector<8x128xf32> to vector<8x16xf32>
    %326 = arith.mulf %325, %304 : vector<8x16xf32>
    %327 = vector.extract_strided_slice %323 {offsets = [0, 0], sizes = [8, 16], strides = [1, 1]} : vector<8x128xf32> to vector<8x16xf32>
    %328 = vector.extract_strided_slice %324 {offsets = [0, 32], sizes = [8, 16], strides = [1, 1]} : vector<8x128xf32> to vector<8x16xf32>
    %329 = arith.mulf %327, %328 : vector<8x16xf32>
    %330 = arith.addf %326, %329 : vector<8x16xf32>
    %331 = vector.extract_strided_slice %323 {offsets = [0, 80], sizes = [8, 16], strides = [1, 1]} : vector<8x128xf32> to vector<8x16xf32>
    %332 = arith.mulf %331, %311 : vector<8x16xf32>
    %333 = vector.extract_strided_slice %323 {offsets = [0, 64], sizes = [8, 16], strides = [1, 1]} : vector<8x128xf32> to vector<8x16xf32>
    %334 = vector.extract_strided_slice %324 {offsets = [0, 96], sizes = [8, 16], strides = [1, 1]} : vector<8x128xf32> to vector<8x16xf32>
    %335 = arith.mulf %333, %334 : vector<8x16xf32>
    %336 = arith.addf %332, %335 : vector<8x16xf32>
    %337 = vector.extract_strided_slice %323 {offsets = [0, 48], sizes = [8, 16], strides = [1, 1]} : vector<8x128xf32> to vector<8x16xf32>
    %338 = math.tanh %330 : vector<8x16xf32>
    %339 = arith.mulf %337, %338 : vector<8x16xf32>
    %340 = vector.extract_strided_slice %323 {offsets = [0, 112], sizes = [8, 16], strides = [1, 1]} : vector<8x128xf32> to vector<8x16xf32>
    %341 = math.tanh %336 : vector<8x16xf32>
    %342 = arith.mulf %340, %341 : vector<8x16xf32>
    %343 = arith.index_cast %c4_i32 : i32 to index
    %c0_89 = arith.constant 0 : index
    %c0_90 = arith.constant 0 : index
    %344 = vector.load %arg2[%343, %c0_89, %c0_90] : memref<8x8x1xf32, #tpu.memory_space<vmem>>, vector<1x8x1xf32>
    %345 = vector.shape_cast %344 : vector<1x8x1xf32> to vector<8x1xf32>
    %346 = arith.index_cast %c4_i32 : i32 to index
    %c0_91 = arith.constant 0 : index
    %c0_92 = arith.constant 0 : index
    %347 = vector.load %arg3[%346, %c0_91, %c0_92] : memref<8x8x1xf32, #tpu.memory_space<vmem>>, vector<1x8x1xf32>
    %348 = vector.shape_cast %347 : vector<1x8x1xf32> to vector<8x1xf32>
    %349 = vector.broadcast %345 : vector<8x1xf32> to vector<8x16xf32>
    %350 = arith.mulf %349, %339 : vector<8x16xf32>
    %351 = vector.broadcast %348 : vector<8x1xf32> to vector<8x16xf32>
    %352 = arith.mulf %351, %342 : vector<8x16xf32>
    %353 = arith.index_cast %c4_i32 : i32 to index
    %c0_93 = arith.constant 0 : index
    %c0_94 = arith.constant 0 : index
    %354 = vector.load %arg25[%353, %c0_93, %c0_94] : memref<8x8x16xf32, #tpu.memory_space<vmem>>, vector<1x8x16xf32>
    %355 = vector.shape_cast %354 : vector<1x8x16xf32> to vector<8x16xf32>
    %356 = vector.shape_cast %350 : vector<8x16xf32> to vector<1x8x16xf32>
    tpu.vector_store %arg25[%353, %c0_93, %c0_94], %356 {strides = array<i32>} : memref<8x8x16xf32, #tpu.memory_space<vmem>>, vector<1x8x16xf32>,
    %c7_i32_95 = arith.constant 7 : i32
    %357 = arith.subi %c7_i32_95, %c4_i32 : i32
    %358 = arith.index_cast %357 : i32 to index
    %c0_96 = arith.constant 0 : index
    %c0_97 = arith.constant 0 : index
    %359 = vector.load %arg26[%358, %c0_96, %c0_97] : memref<8x8x16xf32, #tpu.memory_space<vmem>>, vector<1x8x16xf32>
    %360 = vector.shape_cast %359 : vector<1x8x16xf32> to vector<8x16xf32>
    %361 = vector.shape_cast %352 : vector<8x16xf32> to vector<1x8x16xf32>
    tpu.vector_store %arg26[%358, %c0_96, %c0_97], %361 {strides = array<i32>} : memref<8x8x16xf32, #tpu.memory_space<vmem>>, vector<1x8x16xf32>,
    %cst_98 = arith.constant 1.000000e+00 : f32
    %362 = vector.broadcast %cst_98 : f32 to vector<8x1xf32>
    %363 = arith.subf %362, %345 : vector<8x1xf32>
    %364 = vector.broadcast %363 : vector<8x1xf32> to vector<8x16xf32>
    %365 = arith.mulf %364, %292 : vector<8x16xf32>
    %366 = arith.addf %350, %365 : vector<8x16xf32>
    %cst_99 = arith.constant 1.000000e+00 : f32
    %367 = vector.broadcast %cst_99 : f32 to vector<8x1xf32>
    %368 = arith.subf %367, %348 : vector<8x1xf32>
    %369 = vector.broadcast %368 : vector<8x1xf32> to vector<8x16xf32>
    %370 = arith.mulf %369, %297 : vector<8x16xf32>
    %371 = arith.addf %352, %370 : vector<8x16xf32>
    %372 = vector.broadcast %345 : vector<8x1xf32> to vector<8x16xf32>
    %373 = arith.mulf %372, %330 : vector<8x16xf32>
    %cst_100 = arith.constant 1.000000e+00 : f32
    %374 = vector.broadcast %cst_100 : f32 to vector<8x1xf32>
    %375 = arith.subf %374, %345 : vector<8x1xf32>
    %376 = vector.broadcast %375 : vector<8x1xf32> to vector<8x16xf32>
    %377 = arith.mulf %376, %304 : vector<8x16xf32>
    %378 = arith.addf %373, %377 : vector<8x16xf32>
    %379 = vector.broadcast %348 : vector<8x1xf32> to vector<8x16xf32>
    %380 = arith.mulf %379, %336 : vector<8x16xf32>
    %cst_101 = arith.constant 1.000000e+00 : f32
    %381 = vector.broadcast %cst_101 : f32 to vector<8x1xf32>
    %382 = arith.subf %381, %348 : vector<8x1xf32>
    %383 = vector.broadcast %382 : vector<8x1xf32> to vector<8x16xf32>
    %384 = arith.mulf %383, %311 : vector<8x16xf32>
    %385 = arith.addf %380, %384 : vector<8x16xf32>
    %c5_i32 = arith.constant 5 : i32
    %386 = tpu.concatenate %366, %371 in 1 : vector<8x16xf32>, vector<8x16xf32> -> vector<8x32xf32>
    %387 = arith.truncf %386 : vector<8x32xf32> to vector<8x32xbf16>
    %388 = arith.index_cast %c5_i32 : i32 to index
    %c0_102 = arith.constant 0 : index
    %c0_103 = arith.constant 0 : index
    %389 = vector.load %arg24[%388, %c0_102, %c0_103] : memref<8x8x128xf32, #tpu.memory_space<vmem>>, vector<1x8x128xf32>
    %390 = vector.shape_cast %389 : vector<1x8x128xf32> to vector<8x128xf32>
    %cst_104 = arith.constant dense<0.000000e+00> : vector<8x128xf32>
    %391 = tpu.matmul %387, %14, %cst_104 {dimension_numbers = #tpu.dot_dimension_numbers<[1], [0], [0], [1], [0, 0, 1, 1], [], []>} : vector<8x32xbf16>, vector<32x128xbf16>, vector<8x128xf32> -> vector<8x128xf32>
    %392 = arith.addf %390, %391 : vector<8x128xf32>
    %393 = arith.negf %392 : vector<8x128xf32>
    %394 = math.exp %393 : vector<8x128xf32>
    %cst_105 = arith.constant 1.000000e+00 : f32
    %395 = vector.broadcast %cst_105 : f32 to vector<8x128xf32>
    %396 = arith.addf %395, %394 : vector<8x128xf32>
    %397 = arith.divf %395, %396 : vector<8x128xf32>
    %398 = math.tanh %392 : vector<8x128xf32>
    %399 = vector.extract_strided_slice %397 {offsets = [0, 16], sizes = [8, 16], strides = [1, 1]} : vector<8x128xf32> to vector<8x16xf32>
    %400 = arith.mulf %399, %378 : vector<8x16xf32>
    %401 = vector.extract_strided_slice %397 {offsets = [0, 0], sizes = [8, 16], strides = [1, 1]} : vector<8x128xf32> to vector<8x16xf32>
    %402 = vector.extract_strided_slice %398 {offsets = [0, 32], sizes = [8, 16], strides = [1, 1]} : vector<8x128xf32> to vector<8x16xf32>
    %403 = arith.mulf %401, %402 : vector<8x16xf32>
    %404 = arith.addf %400, %403 : vector<8x16xf32>
    %405 = vector.extract_strided_slice %397 {offsets = [0, 80], sizes = [8, 16], strides = [1, 1]} : vector<8x128xf32> to vector<8x16xf32>
    %406 = arith.mulf %405, %385 : vector<8x16xf32>
    %407 = vector.extract_strided_slice %397 {offsets = [0, 64], sizes = [8, 16], strides = [1, 1]} : vector<8x128xf32> to vector<8x16xf32>
    %408 = vector.extract_strided_slice %398 {offsets = [0, 96], sizes = [8, 16], strides = [1, 1]} : vector<8x128xf32> to vector<8x16xf32>
    %409 = arith.mulf %407, %408 : vector<8x16xf32>
    %410 = arith.addf %406, %409 : vector<8x16xf32>
    %411 = vector.extract_strided_slice %397 {offsets = [0, 48], sizes = [8, 16], strides = [1, 1]} : vector<8x128xf32> to vector<8x16xf32>
    %412 = math.tanh %404 : vector<8x16xf32>
    %413 = arith.mulf %411, %412 : vector<8x16xf32>
    %414 = vector.extract_strided_slice %397 {offsets = [0, 112], sizes = [8, 16], strides = [1, 1]} : vector<8x128xf32> to vector<8x16xf32>
    %415 = math.tanh %410 : vector<8x16xf32>
    %416 = arith.mulf %414, %415 : vector<8x16xf32>
    %417 = arith.index_cast %c5_i32 : i32 to index
    %c0_106 = arith.constant 0 : index
    %c0_107 = arith.constant 0 : index
    %418 = vector.load %arg2[%417, %c0_106, %c0_107] : memref<8x8x1xf32, #tpu.memory_space<vmem>>, vector<1x8x1xf32>
    %419 = vector.shape_cast %418 : vector<1x8x1xf32> to vector<8x1xf32>
    %420 = arith.index_cast %c5_i32 : i32 to index
    %c0_108 = arith.constant 0 : index
    %c0_109 = arith.constant 0 : index
    %421 = vector.load %arg3[%420, %c0_108, %c0_109] : memref<8x8x1xf32, #tpu.memory_space<vmem>>, vector<1x8x1xf32>
    %422 = vector.shape_cast %421 : vector<1x8x1xf32> to vector<8x1xf32>
    %423 = vector.broadcast %419 : vector<8x1xf32> to vector<8x16xf32>
    %424 = arith.mulf %423, %413 : vector<8x16xf32>
    %425 = vector.broadcast %422 : vector<8x1xf32> to vector<8x16xf32>
    %426 = arith.mulf %425, %416 : vector<8x16xf32>
    %427 = arith.index_cast %c5_i32 : i32 to index
    %c0_110 = arith.constant 0 : index
    %c0_111 = arith.constant 0 : index
    %428 = vector.load %arg25[%427, %c0_110, %c0_111] : memref<8x8x16xf32, #tpu.memory_space<vmem>>, vector<1x8x16xf32>
    %429 = vector.shape_cast %428 : vector<1x8x16xf32> to vector<8x16xf32>
    %430 = vector.shape_cast %424 : vector<8x16xf32> to vector<1x8x16xf32>
    tpu.vector_store %arg25[%427, %c0_110, %c0_111], %430 {strides = array<i32>} : memref<8x8x16xf32, #tpu.memory_space<vmem>>, vector<1x8x16xf32>,
    %c7_i32_112 = arith.constant 7 : i32
    %431 = arith.subi %c7_i32_112, %c5_i32 : i32
    %432 = arith.index_cast %431 : i32 to index
    %c0_113 = arith.constant 0 : index
    %c0_114 = arith.constant 0 : index
    %433 = vector.load %arg26[%432, %c0_113, %c0_114] : memref<8x8x16xf32, #tpu.memory_space<vmem>>, vector<1x8x16xf32>
    %434 = vector.shape_cast %433 : vector<1x8x16xf32> to vector<8x16xf32>
    %435 = vector.shape_cast %426 : vector<8x16xf32> to vector<1x8x16xf32>
    tpu.vector_store %arg26[%432, %c0_113, %c0_114], %435 {strides = array<i32>} : memref<8x8x16xf32, #tpu.memory_space<vmem>>, vector<1x8x16xf32>,
    %cst_115 = arith.constant 1.000000e+00 : f32
    %436 = vector.broadcast %cst_115 : f32 to vector<8x1xf32>
    %437 = arith.subf %436, %419 : vector<8x1xf32>
    %438 = vector.broadcast %437 : vector<8x1xf32> to vector<8x16xf32>
    %439 = arith.mulf %438, %366 : vector<8x16xf32>
    %440 = arith.addf %424, %439 : vector<8x16xf32>
    %cst_116 = arith.constant 1.000000e+00 : f32
    %441 = vector.broadcast %cst_116 : f32 to vector<8x1xf32>
    %442 = arith.subf %441, %422 : vector<8x1xf32>
    %443 = vector.broadcast %442 : vector<8x1xf32> to vector<8x16xf32>
    %444 = arith.mulf %443, %371 : vector<8x16xf32>
    %445 = arith.addf %426, %444 : vector<8x16xf32>
    %446 = vector.broadcast %419 : vector<8x1xf32> to vector<8x16xf32>
    %447 = arith.mulf %446, %404 : vector<8x16xf32>
    %cst_117 = arith.constant 1.000000e+00 : f32
    %448 = vector.broadcast %cst_117 : f32 to vector<8x1xf32>
    %449 = arith.subf %448, %419 : vector<8x1xf32>
    %450 = vector.broadcast %449 : vector<8x1xf32> to vector<8x16xf32>
    %451 = arith.mulf %450, %378 : vector<8x16xf32>
    %452 = arith.addf %447, %451 : vector<8x16xf32>
    %453 = vector.broadcast %422 : vector<8x1xf32> to vector<8x16xf32>
    %454 = arith.mulf %453, %410 : vector<8x16xf32>
    %cst_118 = arith.constant 1.000000e+00 : f32
    %455 = vector.broadcast %cst_118 : f32 to vector<8x1xf32>
    %456 = arith.subf %455, %422 : vector<8x1xf32>
    %457 = vector.broadcast %456 : vector<8x1xf32> to vector<8x16xf32>
    %458 = arith.mulf %457, %385 : vector<8x16xf32>
    %459 = arith.addf %454, %458 : vector<8x16xf32>
    %c6_i32 = arith.constant 6 : i32
    %460 = tpu.concatenate %440, %445 in 1 : vector<8x16xf32>, vector<8x16xf32> -> vector<8x32xf32>
    %461 = arith.truncf %460 : vector<8x32xf32> to vector<8x32xbf16>
    %462 = arith.index_cast %c6_i32 : i32 to index
    %c0_119 = arith.constant 0 : index
    %c0_120 = arith.constant 0 : index
    %463 = vector.load %arg24[%462, %c0_119, %c0_120] : memref<8x8x128xf32, #tpu.memory_space<vmem>>, vector<1x8x128xf32>
    %464 = vector.shape_cast %463 : vector<1x8x128xf32> to vector<8x128xf32>
    %cst_121 = arith.constant dense<0.000000e+00> : vector<8x128xf32>
    %465 = tpu.matmul %461, %14, %cst_121 {dimension_numbers = #tpu.dot_dimension_numbers<[1], [0], [0], [1], [0, 0, 1, 1], [], []>} : vector<8x32xbf16>, vector<32x128xbf16>, vector<8x128xf32> -> vector<8x128xf32>
    %466 = arith.addf %464, %465 : vector<8x128xf32>
    %467 = arith.negf %466 : vector<8x128xf32>
    %468 = math.exp %467 : vector<8x128xf32>
    %cst_122 = arith.constant 1.000000e+00 : f32
    %469 = vector.broadcast %cst_122 : f32 to vector<8x128xf32>
    %470 = arith.addf %469, %468 : vector<8x128xf32>
    %471 = arith.divf %469, %470 : vector<8x128xf32>
    %472 = math.tanh %466 : vector<8x128xf32>
    %473 = vector.extract_strided_slice %471 {offsets = [0, 16], sizes = [8, 16], strides = [1, 1]} : vector<8x128xf32> to vector<8x16xf32>
    %474 = arith.mulf %473, %452 : vector<8x16xf32>
    %475 = vector.extract_strided_slice %471 {offsets = [0, 0], sizes = [8, 16], strides = [1, 1]} : vector<8x128xf32> to vector<8x16xf32>
    %476 = vector.extract_strided_slice %472 {offsets = [0, 32], sizes = [8, 16], strides = [1, 1]} : vector<8x128xf32> to vector<8x16xf32>
    %477 = arith.mulf %475, %476 : vector<8x16xf32>
    %478 = arith.addf %474, %477 : vector<8x16xf32>
    %479 = vector.extract_strided_slice %471 {offsets = [0, 80], sizes = [8, 16], strides = [1, 1]} : vector<8x128xf32> to vector<8x16xf32>
    %480 = arith.mulf %479, %459 : vector<8x16xf32>
    %481 = vector.extract_strided_slice %471 {offsets = [0, 64], sizes = [8, 16], strides = [1, 1]} : vector<8x128xf32> to vector<8x16xf32>
    %482 = vector.extract_strided_slice %472 {offsets = [0, 96], sizes = [8, 16], strides = [1, 1]} : vector<8x128xf32> to vector<8x16xf32>
    %483 = arith.mulf %481, %482 : vector<8x16xf32>
    %484 = arith.addf %480, %483 : vector<8x16xf32>
    %485 = vector.extract_strided_slice %471 {offsets = [0, 48], sizes = [8, 16], strides = [1, 1]} : vector<8x128xf32> to vector<8x16xf32>
    %486 = math.tanh %478 : vector<8x16xf32>
    %487 = arith.mulf %485, %486 : vector<8x16xf32>
    %488 = vector.extract_strided_slice %471 {offsets = [0, 112], sizes = [8, 16], strides = [1, 1]} : vector<8x128xf32> to vector<8x16xf32>
    %489 = math.tanh %484 : vector<8x16xf32>
    %490 = arith.mulf %488, %489 : vector<8x16xf32>
    %491 = arith.index_cast %c6_i32 : i32 to index
    %c0_123 = arith.constant 0 : index
    %c0_124 = arith.constant 0 : index
    %492 = vector.load %arg2[%491, %c0_123, %c0_124] : memref<8x8x1xf32, #tpu.memory_space<vmem>>, vector<1x8x1xf32>
    %493 = vector.shape_cast %492 : vector<1x8x1xf32> to vector<8x1xf32>
    %494 = arith.index_cast %c6_i32 : i32 to index
    %c0_125 = arith.constant 0 : index
    %c0_126 = arith.constant 0 : index
    %495 = vector.load %arg3[%494, %c0_125, %c0_126] : memref<8x8x1xf32, #tpu.memory_space<vmem>>, vector<1x8x1xf32>
    %496 = vector.shape_cast %495 : vector<1x8x1xf32> to vector<8x1xf32>
    %497 = vector.broadcast %493 : vector<8x1xf32> to vector<8x16xf32>
    %498 = arith.mulf %497, %487 : vector<8x16xf32>
    %499 = vector.broadcast %496 : vector<8x1xf32> to vector<8x16xf32>
    %500 = arith.mulf %499, %490 : vector<8x16xf32>
    %501 = arith.index_cast %c6_i32 : i32 to index
    %c0_127 = arith.constant 0 : index
    %c0_128 = arith.constant 0 : index
    %502 = vector.load %arg25[%501, %c0_127, %c0_128] : memref<8x8x16xf32, #tpu.memory_space<vmem>>, vector<1x8x16xf32>
    %503 = vector.shape_cast %502 : vector<1x8x16xf32> to vector<8x16xf32>
    %504 = vector.shape_cast %498 : vector<8x16xf32> to vector<1x8x16xf32>
    tpu.vector_store %arg25[%501, %c0_127, %c0_128], %504 {strides = array<i32>} : memref<8x8x16xf32, #tpu.memory_space<vmem>>, vector<1x8x16xf32>,
    %c7_i32_129 = arith.constant 7 : i32
    %505 = arith.subi %c7_i32_129, %c6_i32 : i32
    %506 = arith.index_cast %505 : i32 to index
    %c0_130 = arith.constant 0 : index
    %c0_131 = arith.constant 0 : index
    %507 = vector.load %arg26[%506, %c0_130, %c0_131] : memref<8x8x16xf32, #tpu.memory_space<vmem>>, vector<1x8x16xf32>
    %508 = vector.shape_cast %507 : vector<1x8x16xf32> to vector<8x16xf32>
    %509 = vector.shape_cast %500 : vector<8x16xf32> to vector<1x8x16xf32>
    tpu.vector_store %arg26[%506, %c0_130, %c0_131], %509 {strides = array<i32>} : memref<8x8x16xf32, #tpu.memory_space<vmem>>, vector<1x8x16xf32>,
    %cst_132 = arith.constant 1.000000e+00 : f32
    %510 = vector.broadcast %cst_132 : f32 to vector<8x1xf32>
    %511 = arith.subf %510, %493 : vector<8x1xf32>
    %512 = vector.broadcast %511 : vector<8x1xf32> to vector<8x16xf32>
    %513 = arith.mulf %512, %440 : vector<8x16xf32>
    %514 = arith.addf %498, %513 : vector<8x16xf32>
    %cst_133 = arith.constant 1.000000e+00 : f32
    %515 = vector.broadcast %cst_133 : f32 to vector<8x1xf32>
    %516 = arith.subf %515, %496 : vector<8x1xf32>
    %517 = vector.broadcast %516 : vector<8x1xf32> to vector<8x16xf32>
    %518 = arith.mulf %517, %445 : vector<8x16xf32>
    %519 = arith.addf %500, %518 : vector<8x16xf32>
    %520 = vector.broadcast %493 : vector<8x1xf32> to vector<8x16xf32>
    %521 = arith.mulf %520, %478 : vector<8x16xf32>
    %cst_134 = arith.constant 1.000000e+00 : f32
    %522 = vector.broadcast %cst_134 : f32 to vector<8x1xf32>
    %523 = arith.subf %522, %493 : vector<8x1xf32>
    %524 = vector.broadcast %523 : vector<8x1xf32> to vector<8x16xf32>
    %525 = arith.mulf %524, %452 : vector<8x16xf32>
    %526 = arith.addf %521, %525 : vector<8x16xf32>
    %527 = vector.broadcast %496 : vector<8x1xf32> to vector<8x16xf32>
    %528 = arith.mulf %527, %484 : vector<8x16xf32>
    %cst_135 = arith.constant 1.000000e+00 : f32
    %529 = vector.broadcast %cst_135 : f32 to vector<8x1xf32>
    %530 = arith.subf %529, %496 : vector<8x1xf32>
    %531 = vector.broadcast %530 : vector<8x1xf32> to vector<8x16xf32>
    %532 = arith.mulf %531, %459 : vector<8x16xf32>
    %533 = arith.addf %528, %532 : vector<8x16xf32>
    %c7_i32_136 = arith.constant 7 : i32
    %534 = tpu.concatenate %514, %519 in 1 : vector<8x16xf32>, vector<8x16xf32> -> vector<8x32xf32>
    %535 = arith.truncf %534 : vector<8x32xf32> to vector<8x32xbf16>
    %536 = arith.index_cast %c7_i32_136 : i32 to index
    %c0_137 = arith.constant 0 : index
    %c0_138 = arith.constant 0 : index
    %537 = vector.load %arg24[%536, %c0_137, %c0_138] : memref<8x8x128xf32, #tpu.memory_space<vmem>>, vector<1x8x128xf32>
    %538 = vector.shape_cast %537 : vector<1x8x128xf32> to vector<8x128xf32>
    %cst_139 = arith.constant dense<0.000000e+00> : vector<8x128xf32>
    %539 = tpu.matmul %535, %14, %cst_139 {dimension_numbers = #tpu.dot_dimension_numbers<[1], [0], [0], [1], [0, 0, 1, 1], [], []>} : vector<8x32xbf16>, vector<32x128xbf16>, vector<8x128xf32> -> vector<8x128xf32>
    %540 = arith.addf %538, %539 : vector<8x128xf32>
    %541 = arith.negf %540 : vector<8x128xf32>
    %542 = math.exp %541 : vector<8x128xf32>
    %cst_140 = arith.constant 1.000000e+00 : f32
    %543 = vector.broadcast %cst_140 : f32 to vector<8x128xf32>
    %544 = arith.addf %543, %542 : vector<8x128xf32>
    %545 = arith.divf %543, %544 : vector<8x128xf32>
    %546 = math.tanh %540 : vector<8x128xf32>
    %547 = vector.extract_strided_slice %545 {offsets = [0, 16], sizes = [8, 16], strides = [1, 1]} : vector<8x128xf32> to vector<8x16xf32>
    %548 = arith.mulf %547, %526 : vector<8x16xf32>
    %549 = vector.extract_strided_slice %545 {offsets = [0, 0], sizes = [8, 16], strides = [1, 1]} : vector<8x128xf32> to vector<8x16xf32>
    %550 = vector.extract_strided_slice %546 {offsets = [0, 32], sizes = [8, 16], strides = [1, 1]} : vector<8x128xf32> to vector<8x16xf32>
    %551 = arith.mulf %549, %550 : vector<8x16xf32>
    %552 = arith.addf %548, %551 : vector<8x16xf32>
    %553 = vector.extract_strided_slice %545 {offsets = [0, 80], sizes = [8, 16], strides = [1, 1]} : vector<8x128xf32> to vector<8x16xf32>
    %554 = arith.mulf %553, %533 : vector<8x16xf32>
    %555 = vector.extract_strided_slice %545 {offsets = [0, 64], sizes = [8, 16], strides = [1, 1]} : vector<8x128xf32> to vector<8x16xf32>
    %556 = vector.extract_strided_slice %546 {offsets = [0, 96], sizes = [8, 16], strides = [1, 1]} : vector<8x128xf32> to vector<8x16xf32>
    %557 = arith.mulf %555, %556 : vector<8x16xf32>
    %558 = arith.addf %554, %557 : vector<8x16xf32>
    %559 = vector.extract_strided_slice %545 {offsets = [0, 48], sizes = [8, 16], strides = [1, 1]} : vector<8x128xf32> to vector<8x16xf32>
    %560 = math.tanh %552 : vector<8x16xf32>
    %561 = arith.mulf %559, %560 : vector<8x16xf32>
    %562 = vector.extract_strided_slice %545 {offsets = [0, 112], sizes = [8, 16], strides = [1, 1]} : vector<8x128xf32> to vector<8x16xf32>
    %563 = math.tanh %558 : vector<8x16xf32>
    %564 = arith.mulf %562, %563 : vector<8x16xf32>
    %565 = arith.index_cast %c7_i32_136 : i32 to index
    %c0_141 = arith.constant 0 : index
    %c0_142 = arith.constant 0 : index
    %566 = vector.load %arg2[%565, %c0_141, %c0_142] : memref<8x8x1xf32, #tpu.memory_space<vmem>>, vector<1x8x1xf32>
    %567 = vector.shape_cast %566 : vector<1x8x1xf32> to vector<8x1xf32>
    %568 = arith.index_cast %c7_i32_136 : i32 to index
    %c0_143 = arith.constant 0 : index
    %c0_144 = arith.constant 0 : index
    %569 = vector.load %arg3[%568, %c0_143, %c0_144] : memref<8x8x1xf32, #tpu.memory_space<vmem>>, vector<1x8x1xf32>
    %570 = vector.shape_cast %569 : vector<1x8x1xf32> to vector<8x1xf32>
    %571 = vector.broadcast %567 : vector<8x1xf32> to vector<8x16xf32>
    %572 = arith.mulf %571, %561 : vector<8x16xf32>
    %573 = vector.broadcast %570 : vector<8x1xf32> to vector<8x16xf32>
    %574 = arith.mulf %573, %564 : vector<8x16xf32>
    %575 = arith.index_cast %c7_i32_136 : i32 to index
    %c0_145 = arith.constant 0 : index
    %c0_146 = arith.constant 0 : index
    %576 = vector.load %arg25[%575, %c0_145, %c0_146] : memref<8x8x16xf32, #tpu.memory_space<vmem>>, vector<1x8x16xf32>
    %577 = vector.shape_cast %576 : vector<1x8x16xf32> to vector<8x16xf32>
    %578 = vector.shape_cast %572 : vector<8x16xf32> to vector<1x8x16xf32>
    tpu.vector_store %arg25[%575, %c0_145, %c0_146], %578 {strides = array<i32>} : memref<8x8x16xf32, #tpu.memory_space<vmem>>, vector<1x8x16xf32>,
    %c7_i32_147 = arith.constant 7 : i32
    %579 = arith.subi %c7_i32_147, %c7_i32_136 : i32
    %580 = arith.index_cast %579 : i32 to index
    %c0_148 = arith.constant 0 : index
    %c0_149 = arith.constant 0 : index
    %581 = vector.load %arg26[%580, %c0_148, %c0_149] : memref<8x8x16xf32, #tpu.memory_space<vmem>>, vector<1x8x16xf32>
    %582 = vector.shape_cast %581 : vector<1x8x16xf32> to vector<8x16xf32>
    %583 = vector.shape_cast %574 : vector<8x16xf32> to vector<1x8x16xf32>
    tpu.vector_store %arg26[%580, %c0_148, %c0_149], %583 {strides = array<i32>} : memref<8x8x16xf32, #tpu.memory_space<vmem>>, vector<1x8x16xf32>,
    %cst_150 = arith.constant 1.000000e+00 : f32
    %584 = vector.broadcast %cst_150 : f32 to vector<8x1xf32>
    %585 = arith.subf %584, %567 : vector<8x1xf32>
    %586 = vector.broadcast %585 : vector<8x1xf32> to vector<8x16xf32>
    %587 = arith.mulf %586, %514 : vector<8x16xf32>
    %588 = arith.addf %572, %587 : vector<8x16xf32>
    %cst_151 = arith.constant 1.000000e+00 : f32
    %589 = vector.broadcast %cst_151 : f32 to vector<8x1xf32>
    %590 = arith.subf %589, %570 : vector<8x1xf32>
    %591 = vector.broadcast %590 : vector<8x1xf32> to vector<8x16xf32>
    %592 = arith.mulf %591, %519 : vector<8x16xf32>
    %593 = arith.addf %574, %592 : vector<8x16xf32>
    %594 = vector.broadcast %567 : vector<8x1xf32> to vector<8x16xf32>
    %595 = arith.mulf %594, %552 : vector<8x16xf32>
    %cst_152 = arith.constant 1.000000e+00 : f32
    %596 = vector.broadcast %cst_152 : f32 to vector<8x1xf32>
    %597 = arith.subf %596, %567 : vector<8x1xf32>
    %598 = vector.broadcast %597 : vector<8x1xf32> to vector<8x16xf32>
    %599 = arith.mulf %598, %526 : vector<8x16xf32>
    %600 = arith.addf %595, %599 : vector<8x16xf32>
    %601 = vector.broadcast %570 : vector<8x1xf32> to vector<8x16xf32>
    %602 = arith.mulf %601, %558 : vector<8x16xf32>
    %cst_153 = arith.constant 1.000000e+00 : f32
    %603 = vector.broadcast %cst_153 : f32 to vector<8x1xf32>
    %604 = arith.subf %603, %570 : vector<8x1xf32>
    %605 = vector.broadcast %604 : vector<8x1xf32> to vector<8x16xf32>
    %606 = arith.mulf %605, %533 : vector<8x16xf32>
    %607 = arith.addf %602, %606 : vector<8x16xf32>
    %c8_i32 = arith.constant 8 : i32
    %c0_154 = arith.constant 0 : index
    %c0_155 = arith.constant 0 : index
    %c0_156 = arith.constant 0 : index
    %608 = vector.load %arg25[%c0_154, %c0_155, %c0_156] : memref<8x8x16xf32, #tpu.memory_space<vmem>>, vector<8x8x16xf32>
    %c0_157 = arith.constant 0 : index
    %c0_158 = arith.constant 0 : index
    %c0_159 = arith.constant 0 : index
    %609 = vector.load %arg26[%c0_157, %c0_158, %c0_159] : memref<8x8x16xf32, #tpu.memory_space<vmem>>, vector<8x8x16xf32>
    %610 = vector.shape_cast %608 : vector<8x8x16xf32> to vector<64x16xf32>
    %611 = arith.truncf %610 : vector<64x16xf32> to vector<64x16xbf16>
    %612 = vector.shape_cast %609 : vector<8x8x16xf32> to vector<64x16xf32>
    %613 = arith.truncf %612 : vector<64x16xf32> to vector<64x16xbf16>
    %c0_160 = arith.constant 0 : index
    %c0_161 = arith.constant 0 : index
    %614 = vector.load %arg9[%c0_160, %c0_161] : memref<16x16xbf16, #tpu.memory_space<vmem>>, vector<16x16xbf16>
    %cst_162 = arith.constant dense<0.000000e+00> : vector<64x16xf32>
    %615 = tpu.matmul %611, %614, %cst_162 {dimension_numbers = #tpu.dot_dimension_numbers<[1], [0], [0], [1], [0, 0, 1, 1], [], []>} : vector<64x16xbf16>, vector<16x16xbf16>, vector<64x16xf32> -> vector<64x16xf32>
    %c0_163 = arith.constant 0 : index
    %c0_164 = arith.constant 0 : index
    %616 = vector.load %arg10[%c0_163, %c0_164] : memref<16x16xbf16, #tpu.memory_space<vmem>>, vector<16x16xbf16>
    %cst_165 = arith.constant dense<0.000000e+00> : vector<64x16xf32>
    %617 = tpu.matmul %613, %616, %cst_165 {dimension_numbers = #tpu.dot_dimension_numbers<[1], [0], [0], [1], [0, 0, 1, 1], [], []>} : vector<64x16xbf16>, vector<16x16xbf16>, vector<64x16xf32> -> vector<64x16xf32>
    %618 = arith.addf %615, %617 : vector<64x16xf32>
    %c0_166 = arith.constant 0 : index
    %c0_167 = arith.constant 0 : index
    %619 = vector.load %arg11[%c0_166, %c0_167] : memref<1x16xf32, #tpu.memory_space<vmem>>, vector<1x16xf32>
    %620 = vector.broadcast %619 : vector<1x16xf32> to vector<64x16xf32>
    %621 = arith.addf %618, %620 : vector<64x16xf32>
    %622 = math.tanh %621 : vector<64x16xf32>
    %623 = arith.truncf %622 : vector<64x16xf32> to vector<64x16xbf16>
    %c0_168 = arith.constant 0 : index
    %c0_169 = arith.constant 0 : index
    %624 = vector.load %arg12[%c0_168, %c0_169] : memref<16x1xbf16, #tpu.memory_space<vmem>>, vector<16x1xbf16>
    %cst_170 = arith.constant dense<0.000000e+00> : vector<64x1xf32>
    %625 = tpu.matmul %623, %624, %cst_170 {dimension_numbers = #tpu.dot_dimension_numbers<[1], [0], [0], [1], [0, 0, 1, 1], [], []>} : vector<64x16xbf16>, vector<16x1xbf16>, vector<64x1xf32> -> vector<64x1xf32>
    %c0_171 = arith.constant 0 : index
    %c0_172 = arith.constant 0 : index
    %626 = vector.load %arg13[%c0_171, %c0_172] : memref<1x1xf32, #tpu.memory_space<vmem>>, vector<1x1xf32>
    %627 = vector.broadcast %626 : vector<1x1xf32> to vector<64x1xf32>
    %628 = arith.addf %625, %627 : vector<64x1xf32>
    %629 = vector.shape_cast %628 : vector<64x1xf32> to vector<8x8x1xf32>
    %c0_173 = arith.constant 0 : index
    %c0_174 = arith.constant 0 : index
    %c0_175 = arith.constant 0 : index
    %630 = vector.load %arg4[%c0_173, %c0_174, %c0_175] : memref<8x8x1xf32, #tpu.memory_space<vmem>>, vector<8x8x1xf32>
    %631 = arith.addf %629, %630 : vector<8x8x1xf32>
    %cst_176 = arith.constant dense<0xFF800000> : vector<8x1xf32>
    %632 = vector.multi_reduction <maximumf>, %631, %cst_176 [0] : vector<8x8x1xf32> to vector<8x1xf32>
    %633 = vector.shape_cast %632 : vector<8x1xf32> to vector<1x8x1xf32>
    %634 = vector.broadcast %633 : vector<1x8x1xf32> to vector<8x8x1xf32>
    %635 = arith.subf %631, %634 : vector<8x8x1xf32>
    %636 = math.exp %635 : vector<8x8x1xf32>
    %cst_177 = arith.constant dense<0.000000e+00> : vector<8x1xf32>
    %637 = vector.multi_reduction <add>, %636, %cst_177 [0] : vector<8x8x1xf32> to vector<8x1xf32>
    %638 = vector.shape_cast %637 : vector<8x1xf32> to vector<1x8x1xf32>
    %639 = vector.broadcast %638 : vector<1x8x1xf32> to vector<8x8x1xf32>
    %640 = arith.divf %636, %639 : vector<8x8x1xf32>
    %641 = vector.broadcast %640 : vector<8x8x1xf32> to vector<8x8x16xf32>
    %642 = arith.mulf %641, %608 : vector<8x8x16xf32>
    %cst_178 = arith.constant dense<0.000000e+00> : vector<8x16xf32>
    %643 = vector.multi_reduction <add>, %642, %cst_178 [0] : vector<8x8x16xf32> to vector<8x16xf32>
    %644 = vector.broadcast %640 : vector<8x8x1xf32> to vector<8x8x16xf32>
    %645 = arith.mulf %644, %609 : vector<8x8x16xf32>
    %cst_179 = arith.constant dense<0.000000e+00> : vector<8x16xf32>
    %646 = vector.multi_reduction <add>, %645, %cst_179 [0] : vector<8x8x16xf32> to vector<8x16xf32>
    %647 = arith.truncf %643 : vector<8x16xf32> to vector<8x16xbf16>
    %c0_180 = arith.constant 0 : index
    %c0_181 = arith.constant 0 : index
    %648 = vector.load %arg14[%c0_180, %c0_181] : memref<16x32xbf16, #tpu.memory_space<vmem>>, vector<16x32xbf16>
    %cst_182 = arith.constant dense<0.000000e+00> : vector<8x32xf32>
    %649 = tpu.matmul %647, %648, %cst_182 {dimension_numbers = #tpu.dot_dimension_numbers<[1], [0], [0], [1], [0, 0, 1, 1], [], []>} : vector<8x16xbf16>, vector<16x32xbf16>, vector<8x32xf32> -> vector<8x32xf32>
    %650 = arith.truncf %646 : vector<8x16xf32> to vector<8x16xbf16>
    %c0_183 = arith.constant 0 : index
    %c0_184 = arith.constant 0 : index
    %651 = vector.load %arg15[%c0_183, %c0_184] : memref<16x32xbf16, #tpu.memory_space<vmem>>, vector<16x32xbf16>
    %cst_185 = arith.constant dense<0.000000e+00> : vector<8x32xf32>
    %652 = tpu.matmul %650, %651, %cst_185 {dimension_numbers = #tpu.dot_dimension_numbers<[1], [0], [0], [1], [0, 0, 1, 1], [], []>} : vector<8x16xbf16>, vector<16x32xbf16>, vector<8x32xf32> -> vector<8x32xf32>
    %653 = arith.addf %649, %652 : vector<8x32xf32>
    %c0_186 = arith.constant 0 : index
    %c0_187 = arith.constant 0 : index
    %654 = vector.load %arg16[%c0_186, %c0_187] : memref<1x32xf32, #tpu.memory_space<vmem>>, vector<1x32xf32>
    %655 = vector.broadcast %654 : vector<1x32xf32> to vector<8x32xf32>
    %656 = arith.addf %653, %655 : vector<8x32xf32>
    %657 = arith.truncf %656 : vector<8x32xf32> to vector<8x32xbf16>
    %c0_188 = arith.constant 0 : index
    %c0_189 = arith.constant 0 : index
    %658 = vector.load %arg17[%c0_188, %c0_189] : memref<32x128xbf16, #tpu.memory_space<vmem>>, vector<32x128xbf16>
    %cst_190 = arith.constant dense<0.000000e+00> : vector<8x128xf32>
    %659 = tpu.matmul %657, %658, %cst_190 {dimension_numbers = #tpu.dot_dimension_numbers<[1], [0], [0], [1], [0, 0, 1, 1], [], []>} : vector<8x32xbf16>, vector<32x128xbf16>, vector<8x128xf32> -> vector<8x128xf32>
    %c0_191 = arith.constant 0 : index
    %c0_192 = arith.constant 0 : index
    %660 = vector.load %arg18[%c0_191, %c0_192] : memref<1x128xf32, #tpu.memory_space<vmem>>, vector<1x128xf32>
    %661 = vector.broadcast %660 : vector<1x128xf32> to vector<8x128xf32>
    %662 = arith.addf %659, %661 : vector<8x128xf32>
    %c0_193 = arith.constant 0 : index
    %c0_194 = arith.constant 0 : index
    %663 = vector.load %arg22[%c0_193, %c0_194] : memref<8x128xf32, #tpu.memory_space<vmem>>, vector<8x128xf32>
    tpu.vector_store %arg22[%c0_193, %c0_194], %662 {strides = array<i32>} : memref<8x128xf32, #tpu.memory_space<vmem>>, vector<8x128xf32>,
    %c0_195 = arith.constant 0 : index
    %c0_196 = arith.constant 0 : index
    %664 = vector.load %arg19[%c0_195, %c0_196] : memref<16x128xbf16, #tpu.memory_space<vmem>>, vector<16x128xbf16>
    %cst_197 = arith.constant dense<0.000000e+00> : vector<64x128xf32>
    %665 = tpu.matmul %611, %664, %cst_197 {dimension_numbers = #tpu.dot_dimension_numbers<[1], [0], [0], [1], [0, 0, 1, 1], [], []>} : vector<64x16xbf16>, vector<16x128xbf16>, vector<64x128xf32> -> vector<64x128xf32>
    %c0_198 = arith.constant 0 : index
    %c0_199 = arith.constant 0 : index
    %666 = vector.load %arg20[%c0_198, %c0_199] : memref<16x128xbf16, #tpu.memory_space<vmem>>, vector<16x128xbf16>
    %cst_200 = arith.constant dense<0.000000e+00> : vector<64x128xf32>
    %667 = tpu.matmul %613, %666, %cst_200 {dimension_numbers = #tpu.dot_dimension_numbers<[1], [0], [0], [1], [0, 0, 1, 1], [], []>} : vector<64x16xbf16>, vector<16x128xbf16>, vector<64x128xf32> -> vector<64x128xf32>
    %668 = arith.addf %665, %667 : vector<64x128xf32>
    %c0_201 = arith.constant 0 : index
    %c0_202 = arith.constant 0 : index
    %669 = vector.load %arg21[%c0_201, %c0_202] : memref<1x128xf32, #tpu.memory_space<vmem>>, vector<1x128xf32>
    %670 = vector.broadcast %669 : vector<1x128xf32> to vector<64x128xf32>
    %671 = arith.addf %668, %670 : vector<64x128xf32>
    %c0_203 = arith.constant 0 : index
    %c0_204 = arith.constant 0 : index
    %672 = vector.load %arg23[%c0_203, %c0_204] : memref<64x128xf32, #tpu.memory_space<vmem>>, vector<64x128xf32>
    tpu.vector_store %arg23[%c0_203, %c0_204], %671 {strides = array<i32>} : memref<64x128xf32, #tpu.memory_space<vmem>>, vector<64x128xf32>,
    return
  }
}

</mosaic_0001>

<bundles_post_ra>
// kernel: tpu_custom_call.1
= control target key start
LH: loop header
LB: loop body
LE: loop exit
PB: predicated region body
PF: predicated region fallthrough
CT: control target
= control target key end

     0   :  { %s3700_s0 = inlined_call_operand.vmem [shape: bf16[8,8,16], index: 0, kind: input, shape index: {}]   ;;  %s3701_s1 = inlined_call_operand.vmem [shape: bf16[8,8,16], index: 1, kind: input, shape index: {}]   ;;  %s3702_s2 = inlined_call_operand.vmem [shape: f32[8,8,1], index: 2, kind: input, shape index: {}]   ;;  %s3703_s3 = inlined_call_operand.vmem [shape: f32[8,8,1], index: 3, kind: input, shape index: {}]   ;;  %s3704_s4 = inlined_call_operand.vmem [shape: f32[8,8,1], index: 4, kind: input, shape index: {}]   ;;  %s3705_s5 = inlined_call_operand.vmem [shape: bf16[16,64], index: 5, kind: input, shape index: {}]   ;;  %s3706_s6 = inlined_call_operand.vmem [shape: bf16[16,64], index: 6, kind: input, shape index: {}]   ;;  %s3707_s7 = inlined_call_operand.vmem [shape: f32[1,128], index: 7, kind: input, shape index: {}]   ;;  %s3708_s8 = inlined_call_operand.vmem [shape: bf16[32,128], index: 8, kind: input, shape index: {}]   ;;  %s3709_s9 = inlined_call_operand.vmem [shape: bf16[16,16], index: 9, kind: input, shape index: {}]   ;;  %s3710_s10 = inlined_call_operand.vmem [shape: bf16[16,16], index: 10, kind: input, shape index: {}]   ;;  %s3711_s11 = inlined_call_operand.vmem [shape: f32[1,16], index: 11, kind: input, shape index: {}]   ;;  %s3712_s12 = inlined_call_operand.vmem [shape: bf16[16,1], index: 12, kind: input, shape index: {}]   ;;  %s3713_s13 = inlined_call_operand.<no memory space> [shape: f32[1,1], index: 13, kind: input, shape index: {}]   ;;  %s3714_s14 = inlined_call_operand.vmem [shape: bf16[16,32], index: 14, kind: input, shape index: {}]   ;;  %s3715_s15 = inlined_call_operand.vmem [shape: bf16[16,32], index: 15, kind: input, shape index: {}]   ;;  %s3716_s16 = inlined_call_operand.vmem [shape: f32[1,32], index: 16, kind: input, shape index: {}]   ;;  %s3717_s17 = inlined_call_operand.vmem [shape: bf16[32,128], index: 17, kind: input, shape index: {}]   ;;  %s3718_s18 = inlined_call_operand.vmem [shape: f32[1,128], index: 18, kind: input, shape index: {}]   ;;  %s3719_s19 = inlined_call_operand.vmem [shape: bf16[16,128], index: 19, kind: input, shape index: {}]   ;;  %s3720_s20 = inlined_call_operand.vmem [shape: bf16[16,128], index: 20, kind: input, shape index: {}]   ;;  %s3721_s21 = inlined_call_operand.vmem [shape: f32[1,128], index: 21, kind: input, shape index: {}]   ;;  %s3722_s22 = inlined_call_operand.hbm [shape: f32[8,128], index: 22, kind: output, shape index: {0}]   ;;  %s3723_s23 = inlined_call_operand.hbm [shape: f32[64,128], index: 23, kind: output, shape index: {1}]  }
   0x1   :  { %3729 = sst [smem:[#allocation12_spill]] %s3700_s0  ;;  %v29_v0 = vstv %s3713_s13 }
   0x2   :  { %3730 = sst [smem:[#allocation13_spill]] %s3701_s1  ;;  %30 = vst [vmem:[#allocation5] sm:$0x1] %v29_v0 }
   0x3   :  { %3731 = sst [smem:[#allocation14_spill]] %s3702_s2 }
   0x4   :  { %3732 = sst [smem:[#allocation15_spill]] %s3703_s3 }
   0x5   :  { %3733 = sst [smem:[#allocation16_spill]] %s3704_s4 }
   0x6   :  { %3734 = sst [smem:[#allocation17_spill]] %s3705_s5 }
   0x7   :  { %3735 = sst [smem:[#allocation18_spill]] %s3706_s6 }
   0x8   :  { %3736 = sst [smem:[#allocation19_spill]] %s3707_s7 }
   0x9   :  { %31 = vsyncpa [#allocation7], 0  ;;  %s3737_s5 = sld [smem:[#allocation17_spill]]  ;;  %vm122_vm0 = vcmask 130048   ;;  %s3738_s2 = sld [smem:[#allocation12_spill]]  ;;  %v2821_v4 = vmov 0.0  }
   0xa   :  { %2483 = vmatprep.subr.bf16.mxu1 %v2821_v4  ;;  %s3739_s28 = sld [smem:[#allocation18_spill]]  ;;  %vm2822_vm1 = vmmov 0   ;;  %v2982_v7 = vld [vmem:[%s3708_s8] sm:$0xff]   ;;  %s3740_s1 = sld [smem:[#allocation13_spill]]  ;;  %v2994_v10 = vld [vmem:[%s3708_s8 + $0x8] sm:$0xff]  }
   0xb   :  { %2487 = vmatprep.mubr.msk.bf16.mxu1 %vm2822_vm1, %v2821_v4  ;;  %2484 = vmatpush3.bf16.msra.mxu1 %v2982_v7 }
   0xc   :  { %2485 = vmatprep.subr.bf16.mxu1 %v2821_v4 }
   0xf   :  { %v2640_v1 = vld [vmem:[%s3737_s5] sm:$0xff]   ;;  %v2642_v3 = vld [vmem:[%s3738_s2 + $0x8] sm:$0xff]   ;;  %v2644_v6 = vld [vmem:[%s3738_s2 + $0x10] sm:$0xff]   ;;  %2486 = vmatpush3.bf16.msra.mxu1 %v2994_v10 }
  0x10   :  { %v2641_v2 = vld [vmem:[%s3738_s2] sm:$0xff]   ;;  %2455 = vmatprep.subr.bf16.mxu0 %v2640_v1  ;;  %v2645_v8 = vld [vmem:[%s3738_s2 + $0x18] sm:$0xff]   ;;  %2499 = vmatprep.subr.bf16.mxu1 %v2821_v4  ;;  %v2647_v11 = vld [vmem:[%s3740_s1 + $0x8] sm:$0xff]  }
  0x11   :  { %2456 = vmatpush3.bf16.msra.mxu0 %v2640_v1  ;;  %2457 = vmatprep.mubr.msk.bf16.mxu0 %vm122_vm0, %v2641_v2  ;;  %v2643_v5 = vld [vmem:[%s3739_s28] sm:$0xff]  }
  0x12   :  { %2465 = vmatprep.subr.bf16.mxu0 %v2643_v5  ;;  %v2646_v9 = vld [vmem:[%s3740_s1] sm:$0xff]  }
  0x14   :  { %2458 = vmatmul.mubr.msk.bf16.vlgmr.msra.gmra.mrb[0].mxu0 %vm122_vm0, %v2642_v3 }
  0x15   :  { %2466 = vmatpush3.bf16.msra.mxu0 %v2643_v5  ;;  %2461 = vmatprep.mubr.msk.bf16.mxu0 %vm122_vm0, %v2644_v6 }
  0x16   :  { %2475 = vmatprep.subr.bf16.mxu0 %v2821_v4 }
  0x1c   :  { %2462 = vmatmul.mubr.msk.bf16.gmra.mrb[4].mxu0 %vm122_vm0, %v2645_v8 }
  0x1d   :  { %2467 = vmatprep.mubr.msk.bf16.mxu0 %vm122_vm0, %v2646_v9 }
  0x1e   :  { %32 = vsyncpa [#allocation9], 0  ;;  %v2649_v12 = vld [vmem:[%s3740_s1 + $0x10] sm:$0xff]   ;;  %v2650_v13 = vld [vmem:[%s3740_s1 + $0x18] sm:$0xff]   ;;  %v2823_v14 = vmov 0.0|0.0   ;;  %s2824_s29 = smov 64  }
  0x1f   :  { %v2825_v30 = vmov 0   ;;  %vm337_vm2 = vcmask 523264   ;;  %s3741_s4 = sld [smem:[#allocation19_spill]]  ;;  %s2826_s30 = smov 96   ;;  %vm387_vm3 = vcmask 261120   ;;  %vm1773_vm4 = vcmask 7168  }
  0x20   :  { %2639 = vset.pattern.permute.xlu0 %v2825_v30  ;;  %2638 = vset.pattern.permute.xlu1 %v2825_v30  ;;  %s3742_s5 = sld [smem:[#allocation15_spill]]  ;;  %s2827_s1 = smov 16  }
  0x21   :  { %s3743_s2 = sld [smem:[#allocation14_spill]]  ;;  %s2828_s27 = smov 32  }
  0x22   :  { %s2829_s13 = smov 80  }
  0x24   :  { %2468 = vmatmul.mubr.msk.bf16.vlgmr.msra.gmra.mrb[8].mxu0 %vm122_vm0, %v2647_v11 }
  0x25   :  { %2476 = vmatpush3.bf16.msra.mxu0 %v2982_v7  ;;  %2471 = vmatprep.mubr.msk.bf16.mxu0 %vm122_vm0, %v2649_v12  ;;  %v3055_v36 = vld [vmem:[%s3741_s4] ss:$0 sm:$0xff] }
  0x26   :  { %2477 = vmatprep.subr.bf16.mxu0 %v2821_v4  ;;  %v457_v42 = vld [vmem:[%s3742_s5] sm:$0xff] }
  0x27   :  { %v456_v49 = vld [vmem:[%s3743_s2] sm:$0xff]  ;;  %v489_v51 = vsub.f32 1.0, %v457_v42 }
  0x28   :  { %v481_v50 = vsub.f32 1.0, %v456_v49 }
  0x29   :  { %2478 = vmatpush3.bf16.msra.mxu0 %v2994_v10 }
  0x2a   :  { %2491 = vmatprep.subr.bf16.mxu0 %v2821_v4 }
  0x2c   :  { %2472 = vmatmul.mubr.msk.bf16.gmra.mrb[12].mxu0 %vm122_vm0, %v2650_v13 }
  0x2d   :  { %2479 = vmatprep.mubr.msk.bf16.mxu0 %vm2822_vm1, %v2821_v4 }
  0x34   :  { %2480 = vmatmul.mubr.bf16.vlgmr.msra.gmra.mrb[16].mxu0 %v2823_v14 }
  0x35   :  { %2492 = vmatpush3.bf16.msra.mxu0 %v2982_v7  ;;  %2495 = vmatprep.mubr.msk.bf16.mxu0 %vm2822_vm1, %v2821_v4 }
  0x36   :  { %2493 = vmatprep.subr.bf16.mxu0 %v2821_v4 }
  0x39   :  { %2494 = vmatpush3.bf16.msra.mxu0 %v2994_v10 }
  0x3a   :  { %2507 = vmatprep.subr.bf16.mxu0 %v2821_v4 }
  0xe7   :  { %v3025_v15 = vpop.f32.mrb[0].mxu0 }
  0xe8   :  { %v169_v16 = vpop.f32.mrb[1].mxu0 }
  0xe9   :  { %v3027_v17 = vpop.f32.mrb[2].mxu0 }
  0xea   :  { %v3029_v18 = vpop.f32.mrb[3].mxu0 }
  0xef   :  { %v3031_v19 = vpop.f32.mrb[4].mxu0 }
  0xf0   :  { %v3033_v20 = vpop.f32.mrb[5].mxu0 }
  0xf1   :  { %v3035_v21 = vpop.f32.mrb[6].mxu0 }
  0xf2   :  { %v3037_v22 = vpop.f32.mrb[7].mxu0 }
  0xf7   :  { %v3039_v23 = vpop.f32.mrb[8].mxu0 }
  0xf8   :  { %v274_v24 = vpop.f32.mrb[9].mxu0 }
  0xf9   :  { %313 = vrot.lane.b32.xlu0 %v274_v24, %s2824_s29  ;;  %v3042_v25 = vpop.f32.mrb[10].mxu0 }
  0xfa   :  { %v277_v26 = vpop.f32.mrb[11].mxu0 }
  0xff   :  { %v3044_v27 = vpop.f32.mrb[12].mxu0 }
 0x100   :  { %v3046_v28 = vpop.f32.mrb[13].mxu0 }
 0x101   :  { %v3048_v29 = vpop.f32.mrb[14].mxu0 }
 0x102   :  { %v3050_v31 = vpop.f32.mrb[15].mxu0 }
 0x107   :  { %v425_v32 = vpop.f32.mrb[16].mxu0 }
 0x108   :  { %v2481_v33 = vpop.f32.mrb[17].mxu0 }
 0x109   :  { %v428_v34 = vpop.f32.mrb[18].mxu0  ;;  %v2326_v33 = vld [vmem:[%s3743_s2 + $0x8] sm:$0xff] }
 0x10a   :  { %v2482_v35 = vpop.f32.mrb[19].mxu0  ;;  %v617_v34 = vsub.f32 1.0, %v2326_v33 }
 0x16b   :  { %v314_v37 = vpop.permute.xlu0 %313 }
 0x16c   :  { %v338_v38 = vsel %vm337_vm2, %v169_v16, %v314_v37 }
 0x16d   :  { %v353_v39 = vadd.f32 %v3055_v36, %v338_v38 }
 0x16f   :  { %v431_v40 = vadd.f32 %v425_v32, %v353_v39 }
 0x171   :  { %2661 = vtanh.f32 %v431_v40  ;;  %v2323_v43 = vmul.f32 -1.442695, %v431_v40 }
 0x173   :  { %2663 = vpow2.f32 %v2323_v43 }
 0x17b   :  { %v2662_v41 = vpop.eup %2661 }
 0x17c   :  { %441 = vrot.lane.b32.xlu0 %v2662_v41, %s2826_s30  ;;  %v2327_v41 = vld [vmem:[%s3742_s5 + $0x8] sm:$0xff] }
 0x17d   :  { %v2664_v44 = vpop.eup %2663 }
 0x17e   :  { %v435_v45 = vadd.f32 1.0, %v2664_v44 }
 0x180   :  { %466 = vperm.xlu0 %2639, %v457_v42   ;;  %2665 = vrcp.f32 %v435_v45  ;;  %v625_v42 = vsub.f32 1.0, %v2327_v41 }
 0x18a   :  { %v2666_v46 = vpop.eup %2665 }
 0x18b   :  { %v439_v52 = vmul.f32 0.0, %v2666_v46 }
 0x1ee   :  { %v442_v47 = vpop.permute.xlu0 %441 }
 0x1ef   :  { %v444_v48 = vmul.f32 %v2666_v46, %v442_v47 }
 0x1f1   :  { %446 = vrot.lane.b32.xlu1 %v444_v48, %s2827_s1 }
 0x1f5   :  { %460 = vperm.xlu1 %2638, %v456_v49  }
 0x1f9   :  { %484 = vperm.xlu1 %2638, %v481_v50  }
 0x1fd   :  { %492 = vperm.xlu1 %2638, %v489_v51  }
 0x1ff   :  { %v467_v58 = vpop.permute.xlu0 %466 }
 0x263   :  { %v447_v53 = vpop.permute.xlu1 %446 }
 0x264   :  { %v449_v54 = vadd.f32 %v447_v53, %v439_v52 }
 0x266   :  { %2667 = vtanh.f32 %v449_v54  ;;  %v499_v43 = vmul.f32 %v467_v58, %v449_v54 }
 0x270   :  { %v2668_v55 = vpop.eup %2667 }
 0x271   :  { %452 = vrot.lane.b32.xlu0 %v2668_v55, %s2828_s27 }
 0x274   :  { %v461_v56 = vpop.permute.xlu1 %460 }
 0x275   :  { %v497_v44 = vmul.f32 %v461_v56, %v449_v54 }
 0x278   :  { %v485_v57 = vpop.permute.xlu1 %484 }
 0x279   :  { %v487_v62 = vmul.f32 0.0, %v485_v57 }
 0x27c   :  { %v493_v59 = vpop.permute.xlu1 %492 }
 0x27d   :  { %v495_v63 = vmul.f32 0.0, %v493_v59 }
 0x27f   :  { %v3102_v45 = vadd.f32 %v499_v43, %v495_v63 }
 0x2e3   :  { %v453_v60 = vpop.permute.xlu0 %452 }
 0x2e4   :  { %v455_v61 = vmul.f32 %v2666_v46, %v453_v60  ;;  %v3104_v46 = vadd.f32 %v497_v44, %v487_v62 }
 0x2e6   :  { %v3068_v0 = vmul.f32 %v461_v56, %v455_v61  ;;  %v3070_v1 = vmul.f32 %v467_v58, %v455_v61 }
 0x2e8   :  { %v3073_v2 = vadd.f32 %v495_v63, %v3070_v1  ;;  %v3076_v3 = vadd.f32 %v487_v62, %v3068_v0 }
 0x2ea   :  { %506 = vrot.lane.b32.xlu0 %v3073_v2, %s2828_s27  ;;  %502 = vrot.lane.b32.xlu1 %v3076_v3, %s2829_s13 }
 0x2ee   :  { %315 = vrot.lane.b32.xlu1 %v277_v26, %s2824_s29 }
 0x35c   :  { %v507_v5 = vpop.permute.xlu0 %506  ;;  %v503_v6 = vpop.permute.xlu1 %502 }
 0x35d   :  { %v509_v8 = vsel %vm122_vm0, %v503_v6, %v507_v5 }
 0x35e   :  { %v510_v9 = vpack.c.bf16 %v509_v8, %v509_v8 }
 0x360   :  { %2488 = vmatmul.mubr.msk.bf16.vlgmr.msra.gmra.mrb[0].mxu1 %vm387_vm3, %v510_v9  ;;  %v316_v11 = vpop.permute.xlu1 %315 }
 0x361   :  { %2500 = vmatpush3.bf16.msra.mxu1 %v2982_v7  ;;  %2503 = vmatprep.mubr.msk.bf16.mxu1 %vm2822_vm1, %v2821_v4  ;;  %v339_v12 = vsel %vm337_vm2, %v3029_v18, %v316_v11 }
 0x362   :  { %2501 = vmatprep.subr.bf16.mxu1 %v2821_v4  ;;  %v354_v13 = vadd.f32 %v3055_v36, %v339_v12 }
 0x365   :  { %2502 = vmatpush3.bf16.msra.mxu1 %v2994_v10 }
 0x366   :  { %2515 = vmatprep.subr.bf16.mxu1 %v2821_v4 }
 0x433   :  { %v550_v14 = vpop.f32.mrb[0].mxu1 }
 0x434   :  { %v556_v16 = vadd.f32 %v550_v14, %v354_v13  ;;  %v2489_v24 = vpop.f32.mrb[1].mxu1 }
 0x435   :  { %v553_v26 = vpop.f32.mrb[2].mxu1 }
 0x436   :  { %2669 = vtanh.f32 %v556_v16  ;;  %v2490_v30 = vpop.f32.mrb[3].mxu1  ;;  %v2325_v35 = vmul.f32 -1.442695, %v556_v16 }
 0x438   :  { %2671 = vpow2.f32 %v2325_v35 }
 0x440   :  { %v2670_v32 = vpop.eup %2669 }
 0x441   :  { %566 = vrot.lane.b32.xlu0 %v2670_v32, %s2826_s30 }
 0x442   :  { %v2672_v18 = vpop.eup %2671 }
 0x443   :  { %v560_v37 = vadd.f32 1.0, %v2672_v18 }
 0x445   :  { %595 = vperm.xlu0 %2639, %v2326_v33   ;;  %2673 = vrcp.f32 %v560_v37 }
 0x449   :  { %620 = vperm.xlu0 %2639, %v617_v34   ;;  %v2330_v34 = vld [vmem:[%s3743_s2 + $0x10] sm:$0xff] }
 0x44a   :  { %v755_v35 = vsub.f32 1.0, %v2330_v34 }
 0x44f   :  { %v2674_v38 = vpop.eup %2673 }
 0x450   :  { %v575_v47 = vmul.f32 %v2674_v38, %v3102_v45  ;;  %v564_v48 = vmul.f32 %v2674_v38, %v3104_v46 }
 0x4b3   :  { %v567_v39 = vpop.permute.xlu0 %566 }
 0x4b4   :  { %v569_v40 = vmul.f32 %v2674_v38, %v567_v39 }
 0x4b6   :  { %571 = vrot.lane.b32.xlu1 %v569_v40, %s2827_s1 }
 0x4ba   :  { %601 = vperm.xlu1 %2638, %v2327_v41   ;;  %v2331_v41 = vld [vmem:[%s3742_s5 + $0x10] sm:$0xff] }
 0x4be   :  { %628 = vperm.xlu1 %2638, %v625_v42   ;;  %v763_v42 = vsub.f32 1.0, %v2331_v41 }
 0x4c4   :  { %v596_v54 = vpop.permute.xlu0 %595 }
 0x4c8   :  { %v621_v56 = vpop.permute.xlu0 %620 }
 0x4c9   :  { %v623_v62 = vmul.f32 %v621_v56, %v3076_v3 }
 0x528   :  { %v572_v49 = vpop.permute.xlu1 %571 }
 0x529   :  { %v3108_v50 = vadd.f32 %v572_v49, %v564_v48  ;;  %v3110_v51 = vadd.f32 %v575_v47, %v572_v49  ;;  %v634_v47 = vmul.f32 %v621_v56, %v3104_v46 }
 0x52b   :  { %2675 = vtanh.f32 %v3108_v50  ;;  %v633_v43 = vmul.f32 %v596_v54, %v3108_v50 }
 0x52c   :  { %2677 = vtanh.f32 %v3110_v51 }
 0x535   :  { %v2676_v52 = vpop.eup %2675 }
 0x536   :  { %v2678_v53 = vpop.eup %2677  ;;  %579 = vrot.lane.b32.xlu0 %v2676_v52, %s2828_s27  ;;  %v3159_v52 = vadd.f32 %v634_v47, %v633_v43  ;;  %v2335_v43 = vld [vmem:[%s3742_s5 + $0x18] sm:$0xff] }
 0x537   :  { %585 = vrot.lane.b32.xlu1 %v2678_v53, %s2828_s27 }
 0x539   :  { %v602_v55 = vpop.permute.xlu1 %601 }
 0x53a   :  { %v636_v48 = vmul.f32 %v602_v55, %v3110_v51 }
 0x53d   :  { %v629_v57 = vpop.permute.xlu1 %628 }
 0x53e   :  { %v631_v5 = vmul.f32 %v629_v57, %v3073_v2  ;;  %v637_v44 = vmul.f32 %v629_v57, %v3102_v45 }
 0x540   :  { %v3157_v49 = vadd.f32 %v637_v44, %v636_v48  ;;  %v901_v44 = vsub.f32 1.0, %v2335_v43 }
 0x5a8   :  { %v580_v58 = vpop.permute.xlu0 %579 }
 0x5a9   :  { %v586_v59 = vpop.permute.xlu1 %585  ;;  %v582_v60 = vmul.f32 %v2674_v38, %v580_v58 }
 0x5aa   :  { %v588_v61 = vmul.f32 %v2674_v38, %v586_v59 }
 0x5ab   :  { %v3117_v63 = vmul.f32 %v596_v54, %v582_v60 }
 0x5ac   :  { %v3120_v6 = vmul.f32 %v602_v55, %v588_v61 }
 0x5ad   :  { %v3123_v8 = vadd.f32 %v623_v62, %v3117_v63 }
 0x5ae   :  { %v3126_v9 = vadd.f32 %v631_v5, %v3120_v6 }
 0x5af   :  { %640 = vrot.lane.b32.xlu0 %v3123_v8, %s2829_s13 }
 0x5b0   :  { %644 = vrot.lane.b32.xlu1 %v3126_v9, %s2828_s27 }
 0x5b3   :  { %317 = vrot.lane.b32.xlu0 %v3039_v23, %s2824_s29 }
 0x621   :  { %v641_v3 = vpop.permute.xlu0 %640 }
 0x622   :  { %v645_v11 = vpop.permute.xlu1 %644 }
 0x623   :  { %v647_v2 = vsel %vm122_vm0, %v641_v3, %v645_v11 }
 0x624   :  { %v648_v12 = vpack.c.bf16 %v647_v2, %v647_v2 }
 0x625   :  { %v318_v13 = vpop.permute.xlu0 %317 }
 0x626   :  { %2496 = vmatmul.mubr.msk.bf16.vlgmr.msra.gmra.mrb[20].mxu0 %vm387_vm3, %v648_v12  ;;  %v340_v23 = vsel %vm337_vm2, %v3025_v15, %v318_v13 }
 0x627   :  { %2508 = vmatpush3.bf16.msra.mxu0 %v2982_v7  ;;  %2511 = vmatprep.mubr.msk.bf16.mxu0 %vm2822_vm1, %v2821_v4  ;;  %v355_v14 = vadd.f32 %v3055_v36, %v340_v23 }
 0x628   :  { %2509 = vmatprep.subr.bf16.mxu0 %v2821_v4 }
 0x62b   :  { %2510 = vmatpush3.bf16.msra.mxu0 %v2994_v10 }
 0x62c   :  { %2523 = vmatprep.subr.bf16.mxu0 %v2821_v4 }
 0x6f9   :  { %v688_v16 = vpop.f32.mrb[20].mxu0 }
 0x6fa   :  { %v694_v24 = vadd.f32 %v688_v16, %v355_v14  ;;  %v2497_v26 = vpop.f32.mrb[21].mxu0 }
 0x6fb   :  { %v691_v30 = vpop.f32.mrb[22].mxu0 }
 0x6fc   :  { %2679 = vtanh.f32 %v694_v24  ;;  %v2498_v32 = vpop.f32.mrb[23].mxu0  ;;  %v2329_v18 = vmul.f32 -1.442695, %v694_v24 }
 0x6fe   :  { %2681 = vpow2.f32 %v2329_v18 }
 0x706   :  { %v2680_v33 = vpop.eup %2679 }
 0x707   :  { %704 = vrot.lane.b32.xlu1 %v2680_v33, %s2826_s30 }
 0x708   :  { %v2682_v15 = vpop.eup %2681 }
 0x709   :  { %v698_v37 = vadd.f32 1.0, %v2682_v15  ;;  %v2334_v15 = vld [vmem:[%s3743_s2 + $0x18] sm:$0xff] }
 0x70b   :  { %733 = vperm.xlu1 %2638, %v2330_v34   ;;  %2683 = vrcp.f32 %v698_v37  ;;  %v893_v37 = vsub.f32 1.0, %v2334_v15 }
 0x70f   :  { %758 = vperm.xlu1 %2638, %v755_v35  }
 0x715   :  { %v2684_v38 = vpop.eup %2683 }
 0x716   :  { %v713_v53 = vmul.f32 %v2684_v38, %v3157_v49  ;;  %v702_v58 = vmul.f32 %v2684_v38, %v3159_v52 }
 0x779   :  { %v705_v39 = vpop.permute.xlu1 %704 }
 0x77a   :  { %v707_v40 = vmul.f32 %v2684_v38, %v705_v39 }
 0x77c   :  { %709 = vrot.lane.b32.xlu0 %v707_v40, %s2827_s1 }
 0x780   :  { %739 = vperm.xlu0 %2639, %v2331_v41  }
 0x784   :  { %766 = vperm.xlu0 %2639, %v763_v42  }
 0x78a   :  { %v734_v50 = vpop.permute.xlu1 %733 }
 0x78e   :  { %v759_v54 = vpop.permute.xlu1 %758 }
 0x78f   :  { %v761_v3 = vmul.f32 %v759_v54, %v3123_v8 }
 0x7ee   :  { %v710_v59 = vpop.permute.xlu0 %709 }
 0x7ef   :  { %v3163_v60 = vadd.f32 %v710_v59, %v702_v58  ;;  %v3165_v61 = vadd.f32 %v713_v53, %v710_v59  ;;  %v772_v53 = vmul.f32 %v759_v54, %v3159_v52 }
 0x7f1   :  { %2685 = vtanh.f32 %v3163_v60  ;;  %v771_v47 = vmul.f32 %v734_v50, %v3163_v60 }
 0x7f2   :  { %2687 = vtanh.f32 %v3165_v61 }
 0x7fb   :  { %v2686_v45 = vpop.eup %2685 }
 0x7fc   :  { %v2688_v46 = vpop.eup %2687  ;;  %717 = vrot.lane.b32.xlu1 %v2686_v45, %s2828_s27  ;;  %v3214_v45 = vadd.f32 %v772_v53, %v771_v47  ;;  %v2339_v47 = vld [vmem:[%s3742_s5 + $0x20] sm:$0xff] }
 0x7fd   :  { %723 = vrot.lane.b32.xlu0 %v2688_v46, %s2828_s27 }
 0x7ff   :  { %v740_v51 = vpop.permute.xlu0 %739 }
 0x800   :  { %v774_v58 = vmul.f32 %v740_v51, %v3165_v61 }
 0x803   :  { %v767_v55 = vpop.permute.xlu0 %766 }
 0x804   :  { %v769_v2 = vmul.f32 %v767_v55, %v3126_v9  ;;  %v775_v48 = vmul.f32 %v767_v55, %v3157_v49 }
 0x806   :  { %v3212_v59 = vadd.f32 %v775_v48, %v774_v58  ;;  %v1039_v48 = vsub.f32 1.0, %v2339_v47 }
 0x86e   :  { %v718_v56 = vpop.permute.xlu1 %717 }
 0x86f   :  { %v724_v57 = vpop.permute.xlu0 %723  ;;  %v720_v62 = vmul.f32 %v2684_v38, %v718_v56 }
 0x870   :  { %v726_v5 = vmul.f32 %v2684_v38, %v724_v57 }
 0x871   :  { %v3172_v11 = vmul.f32 %v734_v50, %v720_v62 }
 0x872   :  { %v3175_v12 = vmul.f32 %v740_v51, %v726_v5 }
 0x873   :  { %v3178_v13 = vadd.f32 %v761_v3, %v3172_v11 }
 0x874   :  { %v3181_v23 = vadd.f32 %v769_v2, %v3175_v12 }
 0x875   :  { %778 = vrot.lane.b32.xlu1 %v3178_v13, %s2829_s13 }
 0x876   :  { %782 = vrot.lane.b32.xlu0 %v3181_v23, %s2828_s27 }
 0x879   :  { %319 = vrot.lane.b32.xlu1 %v3042_v25, %s2824_s29 }
 0x8e7   :  { %v779_v8 = vpop.permute.xlu1 %778 }
 0x8e8   :  { %v783_v14 = vpop.permute.xlu0 %782 }
 0x8e9   :  { %v785_v9 = vsel %vm122_vm0, %v779_v8, %v783_v14 }
 0x8ea   :  { %v786_v16 = vpack.c.bf16 %v785_v9, %v785_v9 }
 0x8eb   :  { %v320_v24 = vpop.permute.xlu1 %319 }
 0x8ec   :  { %2504 = vmatmul.mubr.msk.bf16.vlgmr.msra.gmra.mrb[4].mxu1 %vm387_vm3, %v786_v16  ;;  %v341_v25 = vsel %vm337_vm2, %v3027_v17, %v320_v24 }
 0x8ed   :  { %2516 = vmatpush3.bf16.msra.mxu1 %v2982_v7  ;;  %2519 = vmatprep.mubr.msk.bf16.mxu1 %vm2822_vm1, %v2821_v4  ;;  %v356_v26 = vadd.f32 %v3055_v36, %v341_v25 }
 0x8ee   :  { %2517 = vmatprep.subr.bf16.mxu1 %v2821_v4 }
 0x8f1   :  { %2518 = vmatpush3.bf16.msra.mxu1 %v2994_v10 }
 0x8f2   :  { %2531 = vmatprep.subr.bf16.mxu1 %v2821_v4 }
 0x9bf   :  { %v826_v30 = vpop.f32.mrb[4].mxu1 }
 0x9c0   :  { %v832_v32 = vadd.f32 %v826_v30, %v356_v26  ;;  %v2505_v33 = vpop.f32.mrb[5].mxu1 }
 0x9c1   :  { %v829_v34 = vpop.f32.mrb[6].mxu1 }
 0x9c2   :  { %2689 = vtanh.f32 %v832_v32  ;;  %v2506_v35 = vpop.f32.mrb[7].mxu1  ;;  %v2333_v38 = vmul.f32 -1.442695, %v832_v32 }
 0x9c4   :  { %2691 = vpow2.f32 %v2333_v38 }
 0x9cc   :  { %v2690_v18 = vpop.eup %2689 }
 0x9cd   :  { %842 = vrot.lane.b32.xlu0 %v2690_v18, %s2826_s30 }
 0x9ce   :  { %v2692_v17 = vpop.eup %2691 }
 0x9cf   :  { %v836_v39 = vadd.f32 1.0, %v2692_v17  ;;  %v2338_v17 = vld [vmem:[%s3743_s2 + $0x20] sm:$0xff] }
 0x9d1   :  { %871 = vperm.xlu0 %2639, %v2334_v15   ;;  %2693 = vrcp.f32 %v836_v39  ;;  %v1031_v39 = vsub.f32 1.0, %v2338_v17 }
 0x9d5   :  { %896 = vperm.xlu0 %2639, %v893_v37  }
 0x9db   :  { %v2694_v40 = vpop.eup %2693 }
 0x9dc   :  { %v851_v46 = vmul.f32 %v2694_v40, %v3212_v59  ;;  %v840_v56 = vmul.f32 %v2694_v40, %v3214_v45 }
 0xa3f   :  { %v843_v41 = vpop.permute.xlu0 %842 }
 0xa40   :  { %v845_v42 = vmul.f32 %v2694_v40, %v843_v41 }
 0xa42   :  { %847 = vrot.lane.b32.xlu1 %v845_v42, %s2827_s1 }
 0xa46   :  { %877 = vperm.xlu1 %2638, %v2335_v43  }
 0xa4a   :  { %904 = vperm.xlu1 %2638, %v901_v44  }
 0xa50   :  { %v872_v52 = vpop.permute.xlu0 %871 }
 0xa54   :  { %v897_v50 = vpop.permute.xlu0 %896 }
 0xa55   :  { %v899_v8 = vmul.f32 %v897_v50, %v3178_v13 }
 0xab4   :  { %v848_v57 = vpop.permute.xlu1 %847 }
 0xab5   :  { %v850_v62 = vadd.f32 %v848_v57, %v840_v56  ;;  %v3218_v5 = vadd.f32 %v851_v46, %v848_v57  ;;  %v910_v46 = vmul.f32 %v897_v50, %v3214_v45 }
 0xab7   :  { %2695 = vtanh.f32 %v850_v62  ;;  %v909_v53 = vmul.f32 %v872_v52, %v850_v62 }
 0xab8   :  { %2697 = vtanh.f32 %v3218_v5 }
 0xac1   :  { %v2696_v49 = vpop.eup %2695 }
 0xac2   :  { %v2698_v60 = vpop.eup %2697  ;;  %855 = vrot.lane.b32.xlu0 %v2696_v49, %s2828_s27  ;;  %v3264_v49 = vadd.f32 %v910_v46, %v909_v53 }
 0xac3   :  { %861 = vrot.lane.b32.xlu1 %v2698_v60, %s2828_s27 }
 0xac5   :  { %v878_v61 = vpop.permute.xlu1 %877 }
 0xac6   :  { %v912_v56 = vmul.f32 %v878_v61, %v3218_v5 }
 0xac9   :  { %v905_v51 = vpop.permute.xlu1 %904 }
 0xaca   :  { %v907_v9 = vmul.f32 %v905_v51, %v3181_v23  ;;  %v913_v58 = vmul.f32 %v905_v51, %v3212_v59 }
 0xacc   :  { %v3262_v57 = vadd.f32 %v913_v58, %v912_v56 }
 0xb34   :  { %v856_v54 = vpop.permute.xlu0 %855 }
 0xb35   :  { %v862_v55 = vpop.permute.xlu1 %861  ;;  %v858_v3 = vmul.f32 %v2694_v40, %v856_v54 }
 0xb36   :  { %v864_v2 = vmul.f32 %v2694_v40, %v862_v55 }
 0xb37   :  { %v3224_v14 = vmul.f32 %v872_v52, %v858_v3 }
 0xb38   :  { %v3227_v16 = vmul.f32 %v878_v61, %v864_v2 }
 0xb39   :  { %v3230_v24 = vadd.f32 %v899_v8, %v3224_v14 }
 0xb3a   :  { %v3233_v25 = vadd.f32 %v907_v9, %v3227_v16 }
 0xb3b   :  { %916 = vrot.lane.b32.xlu0 %v3230_v24, %s2829_s13 }
 0xb3c   :  { %920 = vrot.lane.b32.xlu1 %v3233_v25, %s2828_s27 }
 0xb3f   :  { %321 = vrot.lane.b32.xlu0 %v3046_v28, %s2824_s29 }
 0xbad   :  { %v917_v13 = vpop.permute.xlu0 %916 }
 0xbae   :  { %v921_v26 = vpop.permute.xlu1 %920 }
 0xbaf   :  { %v923_v23 = vsel %vm122_vm0, %v917_v13, %v921_v26 }
 0xbb0   :  { %v924_v30 = vpack.c.bf16 %v923_v23, %v923_v23 }
 0xbb1   :  { %v322_v32 = vpop.permute.xlu0 %321 }
 0xbb2   :  { %2512 = vmatmul.mubr.msk.bf16.vlgmr.msra.gmra.mrb[24].mxu0 %vm387_vm3, %v924_v30  ;;  %v342_v28 = vsel %vm337_vm2, %v3033_v20, %v322_v32 }
 0xbb3   :  { %2524 = vmatpush3.bf16.msra.mxu0 %v2982_v7  ;;  %2527 = vmatprep.mubr.msk.bf16.mxu0 %vm2822_vm1, %v2821_v4  ;;  %v357_v33 = vadd.f32 %v3055_v36, %v342_v28 }
 0xbb4   :  { %2525 = vmatprep.subr.bf16.mxu0 %v2821_v4 }
 0xbb7   :  { %2526 = vmatpush3.bf16.msra.mxu0 %v2994_v10 }
 0xc85   :  { %v964_v34 = vpop.f32.mrb[24].mxu0 }
 0xc86   :  { %v970_v35 = vadd.f32 %v964_v34, %v357_v33  ;;  %v2513_v18 = vpop.f32.mrb[25].mxu0 }
 0xc87   :  { %v967_v15 = vpop.f32.mrb[26].mxu0 }
 0xc88   :  { %2699 = vtanh.f32 %v970_v35  ;;  %v2514_v37 = vpop.f32.mrb[27].mxu0  ;;  %v2337_v40 = vmul.f32 -1.442695, %v970_v35 }
 0xc8a   :  { %2701 = vpow2.f32 %v2337_v40  ;;  %v2342_v40 = vld [vmem:[%s3743_s2 + $0x28] sm:$0xff] }
 0xc92   :  { %v2700_v38 = vpop.eup %2699 }
 0xc93   :  { %980 = vrot.lane.b32.xlu1 %v2700_v38, %s2826_s30 }
 0xc94   :  { %v2702_v20 = vpop.eup %2701 }
 0xc95   :  { %v974_v41 = vadd.f32 1.0, %v2702_v20 }
 0xc97   :  { %1009 = vperm.xlu1 %2638, %v2338_v17   ;;  %2703 = vrcp.f32 %v974_v41 }
 0xc9b   :  { %1034 = vperm.xlu1 %2638, %v1031_v39  }
 0xca1   :  { %v2704_v42 = vpop.eup %2703 }
 0xca2   :  { %v989_v60 = vmul.f32 %v2704_v42, %v3262_v57  ;;  %v978_v54 = vmul.f32 %v2704_v42, %v3264_v49 }
 0xd05   :  { %v981_v43 = vpop.permute.xlu1 %980 }
 0xd06   :  { %v983_v44 = vmul.f32 %v2704_v42, %v981_v43 }
 0xd08   :  { %985 = vrot.lane.b32.xlu0 %v983_v44, %s2827_s1 }
 0xd0c   :  { %1015 = vperm.xlu0 %2639, %v2339_v47   ;;  %v2343_v47 = vld [vmem:[%s3742_s5 + $0x28] sm:$0xff] }
 0xd10   :  { %1042 = vperm.xlu0 %2639, %v1039_v48   ;;  %v1177_v48 = vsub.f32 1.0, %v2343_v47 }
 0xd16   :  { %v1010_v45 = vpop.permute.xlu1 %1009 }
 0xd1a   :  { %v1035_v52 = vpop.permute.xlu1 %1034 }
 0xd1b   :  { %v1037_v13 = vmul.f32 %v1035_v52, %v3230_v24  ;;  %v1048_v46 = vmul.f32 %v1035_v52, %v3264_v49 }
 0xd7a   :  { %v986_v55 = vpop.permute.xlu0 %985 }
 0xd7b   :  { %v988_v3 = vadd.f32 %v986_v55, %v978_v54  ;;  %v3268_v2 = vadd.f32 %v989_v60, %v986_v55 }
 0xd7d   :  { %2705 = vtanh.f32 %v988_v3  ;;  %v1047_v53 = vmul.f32 %v1010_v45, %v988_v3 }
 0xd7e   :  { %2707 = vtanh.f32 %v3268_v2 }
 0xd7f   :  { %v3314_v54 = vadd.f32 %v1048_v46, %v1047_v53 }
 0xd87   :  { %v2706_v59 = vpop.eup %2705 }
 0xd88   :  { %v2708_v62 = vpop.eup %2707  ;;  %993 = vrot.lane.b32.xlu1 %v2706_v59, %s2828_s27 }
 0xd89   :  { %999 = vrot.lane.b32.xlu0 %v2708_v62, %s2828_s27 }
 0xd8b   :  { %v1016_v5 = vpop.permute.xlu0 %1015 }
 0xd8c   :  { %v1050_v56 = vmul.f32 %v1016_v5, %v3268_v2 }
 0xd8f   :  { %v1043_v61 = vpop.permute.xlu0 %1042 }
 0xd90   :  { %v1045_v23 = vmul.f32 %v1043_v61, %v3233_v25  ;;  %v1051_v58 = vmul.f32 %v1043_v61, %v3262_v57 }
 0xd92   :  { %v3312_v60 = vadd.f32 %v1051_v58, %v1050_v56 }
 0xdfa   :  { %v994_v50 = vpop.permute.xlu1 %993 }
 0xdfb   :  { %v1000_v51 = vpop.permute.xlu0 %999  ;;  %v996_v8 = vmul.f32 %v2704_v42, %v994_v50 }
 0xdfc   :  { %v1002_v9 = vmul.f32 %v2704_v42, %v1000_v51 }
 0xdfd   :  { %v3274_v26 = vmul.f32 %v1010_v45, %v996_v8 }
 0xdfe   :  { %v3277_v30 = vmul.f32 %v1016_v5, %v1002_v9 }
 0xdff   :  { %v3280_v32 = vadd.f32 %v1037_v13, %v3274_v26 }
 0xe00   :  { %v3283_v28 = vadd.f32 %v1045_v23, %v3277_v30 }
 0xe01   :  { %1054 = vrot.lane.b32.xlu1 %v3280_v32, %s2829_s13 }
 0xe02   :  { %1058 = vrot.lane.b32.xlu0 %v3283_v28, %s2828_s27 }
 0xe05   :  { %323 = vrot.lane.b32.xlu1 %v3050_v31, %s2824_s29 }
 0xe73   :  { %v1055_v24 = vpop.permute.xlu1 %1054 }
 0xe74   :  { %v1059_v33 = vpop.permute.xlu0 %1058 }
 0xe75   :  { %v1061_v25 = vsel %vm122_vm0, %v1055_v24, %v1059_v33 }
 0xe76   :  { %v1062_v34 = vpack.c.bf16 %v1061_v25, %v1061_v25 }
 0xe77   :  { %v324_v35 = vpop.permute.xlu1 %323 }
 0xe78   :  { %2520 = vmatmul.mubr.msk.bf16.vlgmr.msra.gmra.mrb[8].mxu1 %vm387_vm3, %v1062_v34  ;;  %v343_v31 = vsel %vm337_vm2, %v3037_v22, %v324_v35 }
 0xe79   :  { %2532 = vmatpush3.bf16.msra.mxu1 %v2982_v7  ;;  %2535 = vmatprep.mubr.msk.bf16.mxu1 %vm2822_vm1, %v2821_v4  ;;  %v358_v18 = vadd.f32 %v3055_v36, %v343_v31 }
 0xe7a   :  { %2533 = vmatprep.subr.bf16.mxu1 %v2821_v4 }
 0xe7d   :  { %2534 = vmatpush3.bf16.msra.mxu1 %v2994_v10  ;;  %v1169_v10 = vsub.f32 1.0, %v2342_v40 }
 0xf4b   :  { %v1102_v15 = vpop.f32.mrb[8].mxu1 }
 0xf4c   :  { %v1108_v37 = vadd.f32 %v1102_v15, %v358_v18  ;;  %v2521_v38 = vpop.f32.mrb[9].mxu1 }
 0xf4d   :  { %v1105_v17 = vpop.f32.mrb[10].mxu1 }
 0xf4e   :  { %2709 = vtanh.f32 %v1108_v37  ;;  %v2522_v39 = vpop.f32.mrb[11].mxu1  ;;  %v2341_v20 = vmul.f32 -1.442695, %v1108_v37 }
 0xf50   :  { %2711 = vpow2.f32 %v2341_v20 }
 0xf58   :  { %v2710_v7 = vpop.eup %2709 }
 0xf59   :  { %1118 = vrot.lane.b32.xlu0 %v2710_v7, %s2826_s30 }
 0xf5a   :  { %v2712_v22 = vpop.eup %2711 }
 0xf5b   :  { %v1112_v41 = vadd.f32 1.0, %v2712_v22 }
 0xf5d   :  { %1147 = vperm.xlu0 %2639, %v2342_v40   ;;  %2713 = vrcp.f32 %v1112_v41 }
 0xf61   :  { %1172 = vperm.xlu0 %2639, %v1169_v10   ;;  %v2346_v10 = vld [vmem:[%s3743_s2 + $0x30] sm:$0xff] }
 0xf62   :  { %v1307_v20 = vsub.f32 1.0, %v2346_v10 }
 0xf67   :  { %v2714_v42 = vpop.eup %2713 }
 0xf68   :  { %v1127_v55 = vmul.f32 %v2714_v42, %v3312_v60  ;;  %v1116_v59 = vmul.f32 %v2714_v42, %v3314_v54 }
 0xfcb   :  { %v1119_v43 = vpop.permute.xlu0 %1118 }
 0xfcc   :  { %v1121_v44 = vmul.f32 %v2714_v42, %v1119_v43 }
 0xfce   :  { %1123 = vrot.lane.b32.xlu1 %v1121_v44, %s2827_s1 }
 0xfd2   :  { %1153 = vperm.xlu1 %2638, %v2343_v47   ;;  %v2347_v47 = vld [vmem:[%s3742_s5 + $0x30] sm:$0xff] }
 0xfd6   :  { %1180 = vperm.xlu1 %2638, %v1177_v48   ;;  %v1315_v48 = vsub.f32 1.0, %v2347_v47 }
 0xfdc   :  { %v1148_v57 = vpop.permute.xlu0 %1147 }
 0xfe0   :  { %v1173_v2 = vpop.permute.xlu0 %1172 }
 0xfe1   :  { %v1175_v13 = vmul.f32 %v1173_v2, %v3280_v32  ;;  %v1186_v46 = vmul.f32 %v1173_v2, %v3314_v54 }
0x1040   :  { %v1124_v62 = vpop.permute.xlu1 %1123 }
0x1041   :  { %v1126_v50 = vadd.f32 %v1124_v62, %v1116_v59  ;;  %v1128_v51 = vadd.f32 %v1127_v55, %v1124_v62 }
0x1043   :  { %2715 = vtanh.f32 %v1126_v50  ;;  %v1185_v53 = vmul.f32 %v1148_v57, %v1126_v50 }
0x1044   :  { %2717 = vtanh.f32 %v1128_v51 }
0x1045   :  { %v3355_v59 = vadd.f32 %v1186_v46, %v1185_v53 }
0x104d   :  { %v2716_v3 = vpop.eup %2715 }
0x104e   :  { %v2718_v45 = vpop.eup %2717  ;;  %1131 = vrot.lane.b32.xlu0 %v2716_v3, %s2828_s27 }
0x104f   :  { %1137 = vrot.lane.b32.xlu1 %v2718_v45, %s2828_s27 }
0x1051   :  { %v1154_v49 = vpop.permute.xlu1 %1153 }
0x1052   :  { %v1188_v56 = vmul.f32 %v1154_v49, %v1128_v51 }
0x1055   :  { %v1181_v5 = vpop.permute.xlu1 %1180 }
0x1056   :  { %v1183_v24 = vmul.f32 %v1181_v5, %v3283_v28  ;;  %v1189_v58 = vmul.f32 %v1181_v5, %v3312_v60 }
0x1058   :  { %v3353_v55 = vadd.f32 %v1189_v58, %v1188_v56 }
0x10c0   :  { %v1132_v52 = vpop.permute.xlu0 %1131 }
0x10c1   :  { %v1138_v61 = vpop.permute.xlu1 %1137  ;;  %v1134_v8 = vmul.f32 %v2714_v42, %v1132_v52 }
0x10c2   :  { %v1140_v9 = vmul.f32 %v2714_v42, %v1138_v61 }
0x10c3   :  { %v3321_v23 = vmul.f32 %v1148_v57, %v1134_v8 }
0x10c4   :  { %v3324_v33 = vmul.f32 %v1154_v49, %v1140_v9 }
0x10c5   :  { %v3327_v25 = vadd.f32 %v1175_v13, %v3321_v23 }
0x10c6   :  { %v3330_v34 = vadd.f32 %v1183_v24, %v3324_v33 }
0x10c7   :  { %1192 = vrot.lane.b32.xlu0 %v3327_v25, %s2829_s13 }
0x10c8   :  { %1196 = vrot.lane.b32.xlu1 %v3330_v34, %s2828_s27 }
0x10cb   :  { %325 = vrot.lane.b32.xlu0 %v3044_v27, %s2824_s29 }
0x1139   :  { %v1193_v32 = vpop.permute.xlu0 %1192 }
0x113a   :  { %v1197_v35 = vpop.permute.xlu1 %1196 }
0x113b   :  { %v1199_v28 = vsel %vm122_vm0, %v1193_v32, %v1197_v35 }
0x113c   :  { %v1200_v31 = vpack.c.bf16 %v1199_v28, %v1199_v28 }
0x113d   :  { %v326_v18 = vpop.permute.xlu0 %325 }
0x113e   :  { %2528 = vmatmul.mubr.msk.bf16.vlgmr.msra.gmra.mrb[28].mxu0 %vm387_vm3, %v1200_v31  ;;  %v344_v15 = vsel %vm337_vm2, %v3031_v19, %v326_v18 }
0x113f   :  { %v359_v37 = vadd.f32 %v3055_v36, %v344_v15 }
0x1211   :  { %v1240_v38 = vpop.f32.mrb[28].mxu0 }
0x1212   :  { %v1246_v17 = vadd.f32 %v1240_v38, %v359_v37  ;;  %v2529_v39 = vpop.f32.mrb[29].mxu0 }
0x1213   :  { %v1243_v7 = vpop.f32.mrb[30].mxu0 }
0x1214   :  { %2719 = vtanh.f32 %v1246_v17  ;;  %v2530_v40 = vpop.f32.mrb[31].mxu0  ;;  %v2345_v22 = vmul.f32 -1.442695, %v1246_v17 }
0x1216   :  { %2721 = vpow2.f32 %v2345_v22 }
0x121e   :  { %v2720_v27 = vpop.eup %2719 }
0x121f   :  { %1256 = vrot.lane.b32.xlu1 %v2720_v27, %s2826_s30 }
0x1220   :  { %v2722_v19 = vpop.eup %2721 }
0x1221   :  { %v1250_v41 = vadd.f32 1.0, %v2722_v19 }
0x1223   :  { %1285 = vperm.xlu1 %2638, %v2346_v10   ;;  %2723 = vrcp.f32 %v1250_v41 }
0x1227   :  { %1310 = vperm.xlu1 %2638, %v1307_v20   ;;  %v2351_v20 = vld [vmem:[%s3742_s5 + $0x38] sm:$0xff] }
0x122d   :  { %v2724_v42 = vpop.eup %2723 }
0x122e   :  { %v1265_v62 = vmul.f32 %v2724_v42, %v3353_v55  ;;  %v1254_v3 = vmul.f32 %v2724_v42, %v3355_v59 }
0x1291   :  { %v1257_v43 = vpop.permute.xlu1 %1256 }
0x1292   :  { %v1259_v44 = vmul.f32 %v2724_v42, %v1257_v43 }
0x1294   :  { %1261 = vrot.lane.b32.xlu0 %v1259_v44, %s2827_s1 }
0x1298   :  { %1291 = vperm.xlu0 %2639, %v2347_v47  }
0x129c   :  { %1318 = vperm.xlu0 %2639, %v1315_v48  }
0x12a2   :  { %v3367_v50 = vpop.permute.xlu1 %1285 }
0x12a6   :  { %v3371_v57 = vpop.permute.xlu1 %1310 }
0x12a7   :  { %v1313_v13 = vmul.f32 %v3371_v57, %v3327_v25 }
0x1306   :  { %v1262_v45 = vpop.permute.xlu0 %1261 }
0x1307   :  { %v3359_v52 = vadd.f32 %v1262_v45, %v1254_v3  ;;  %v3361_v61 = vadd.f32 %v1265_v62, %v1262_v45  ;;  %v1324_v3 = vmul.f32 %v3371_v57, %v3355_v59 }
0x1309   :  { %2725 = vtanh.f32 %v3359_v52  ;;  %v1323_v56 = vmul.f32 %v3367_v50, %v3359_v52  ;;  %v2652_v52 = vld [vmem:[%s3710_s10] sm:$0xff]  }
0x130a   :  { %2727 = vtanh.f32 %v3361_v61  ;;  %2539 = vmatprep.subr.bf16.mxu0 %v2652_v52 }
0x130b   :  { %2540 = vmatpush3.bf16.msra.mxu0 %v2652_v52 }
0x1313   :  { %v2726_v60 = vpop.eup %2725 }
0x1314   :  { %v2728_v54 = vpop.eup %2727  ;;  %1269 = vrot.lane.b32.xlu1 %v2726_v60, %s2828_s27  ;;  %v1325_v60 = vadd.f32 %v1324_v3, %v1323_v56 }
0x1315   :  { %1275 = vrot.lane.b32.xlu0 %v2728_v54, %s2828_s27 }
0x1317   :  { %v3369_v51 = vpop.permute.xlu0 %1291 }
0x1318   :  { %v1326_v46 = vmul.f32 %v3369_v51, %v3361_v61 }
0x131b   :  { %v3373_v49 = vpop.permute.xlu0 %1318 }
0x131c   :  { %v1321_v32 = vmul.f32 %v3373_v49, %v3330_v34  ;;  %v1327_v58 = vmul.f32 %v3373_v49, %v3353_v55 }
0x131e   :  { %v1328_v62 = vadd.f32 %v1327_v58, %v1326_v46 }
0x1386   :  { %v1270_v2 = vpop.permute.xlu1 %1269 }
0x1387   :  { %v1276_v5 = vpop.permute.xlu0 %1275  ;;  %v1272_v8 = vmul.f32 %v2724_v42, %v1270_v2 }
0x1388   :  { %v1278_v9 = vmul.f32 %v2724_v42, %v1276_v5 }
0x1389   :  { %v1288_v24 = vmul.f32 %v3367_v50, %v1272_v8 }
0x138a   :  { %v1294_v35 = vmul.f32 %v3369_v51, %v1278_v9  ;;  %v2653_v51 = vld [vmem:[%s3709_s9] sm:$0xff]  }
0x138b   :  { %v1314_v28 = vadd.f32 %v1313_v13, %v1288_v24  ;;  %2549 = vmatprep.subr.bf16.mxu0 %v2653_v51 }
0x138c   :  { %v1322_v31 = vadd.f32 %v1321_v32, %v1294_v35 }
0x138d   :  { %1330 = vrot.lane.b32.xlu1 %v1314_v28, %s2829_s13 }
0x138e   :  { %1334 = vrot.lane.b32.xlu0 %v1322_v31, %s2828_s27 }
0x1391   :  { %327 = vrot.lane.b32.xlu1 %v3048_v29, %s2824_s29 }
0x13ff   :  { %v1331_v18 = vpop.permute.xlu1 %1330 }
0x1400   :  { %v1335_v15 = vpop.permute.xlu0 %1334 }
0x1401   :  { %v1337_v25 = vsel %vm122_vm0, %v1331_v18, %v1335_v15 }
0x1402   :  { %v1338_v37 = vpack.c.bf16 %v1337_v25, %v1337_v25 }
0x1403   :  { %v328_v38 = vpop.permute.xlu1 %327 }
0x1404   :  { %2536 = vmatmul.mubr.msk.bf16.vlgmr.msra.gmra.mrb[12].mxu1 %vm387_vm3, %v1338_v37  ;;  %v345_v34 = vsel %vm337_vm2, %v3035_v21, %v328_v38  ;;  %v2350_v21 = vld [vmem:[%s3743_s2 + $0x38] sm:$0xff] }
0x1405   :  { %v360_v17 = vadd.f32 %v3055_v36, %v345_v34 }
0x14d7   :  { %v1378_v39 = vpop.f32.mrb[12].mxu1 }
0x14d8   :  { %v1384_v7 = vadd.f32 %v1378_v39, %v360_v17  ;;  %v2537_v40 = vpop.f32.mrb[13].mxu1 }
0x14d9   :  { %v1381_v27 = vpop.f32.mrb[14].mxu1 }
0x14da   :  { %2729 = vtanh.f32 %v1384_v7  ;;  %v2538_v10 = vpop.f32.mrb[15].mxu1  ;;  %v2349_v36 = vmul.f32 -1.442695, %v1384_v7 }
0x14dc   :  { %2731 = vpow2.f32 %v2349_v36 }
0x14e4   :  { %v2730_v29 = vpop.eup %2729 }
0x14e5   :  { %1394 = vrot.lane.b32.xlu0 %v2730_v29, %s2826_s30 }
0x14e9   :  { %1429 = vperm.xlu0 %2639, %v2351_v20  }
0x14ed   :  { %1423 = vperm.xlu0 %2639, %v2350_v21  }
0x14f1   :  { %1302 = vrot.lane.b32.xlu0 %v1294_v35, %s2827_s1 }
0x14f5   :  { %1026 = vrot.lane.b32.xlu0 %v3277_v30, %s2827_s1  ;;  %v2732_v30 = vpop.eup %2731 }
0x14f6   :  { %v1388_v22 = vadd.f32 1.0, %v2732_v30 }
0x14f8   :  { %2733 = vrcp.f32 %v1388_v22 }
0x14f9   :  { %750 = vrot.lane.b32.xlu0 %v3175_v12, %s2827_s1 }
0x14fd   :  { %476 = vrot.lane.b32.xlu0 %v3070_v1, %s2827_s1 }
0x1501   :  { %471 = vrot.lane.b32.xlu0 %v3068_v0, %s2829_s13 }
0x1502   :  { %v2734_v12 = vpop.eup %2733 }
0x1503   :  { %v1403_v45 = vmul.f32 %v2734_v12, %v1328_v62  ;;  %v1392_v5 = vmul.f32 %v2734_v12, %v1325_v60 }
0x1505   :  { %744 = vrot.lane.b32.xlu0 %v3172_v11, %s2829_s13 }
0x1509   :  { %1020 = vrot.lane.b32.xlu0 %v3274_v26, %s2829_s13 }
0x150d   :  { %1296 = vrot.lane.b32.xlu0 %v1288_v24, %s2829_s13 }
0x1557   :  { %v1395_v19 = vpop.permute.xlu0 %1394 }
0x1558   :  { %v1397_v41 = vmul.f32 %v2734_v12, %v1395_v19 }
0x155a   :  { %1399 = vrot.lane.b32.xlu1 %v1397_v41, %s2827_s1 }
0x1568   :  { %v1430_v1 = vpop.permute.xlu0 %1429 }
0x156c   :  { %v1424_v0 = vpop.permute.xlu0 %1423 }
0x1570   :  { %v1303_v42 = vpop.permute.xlu0 %1302 }
0x1571   :  { %1306 = vst.msk [vmem:[#allocation4 + $0x8] sm:$0xff] %vm122_vm0, %v1303_v42 }
0x1574   :  { %v1027_v11 = vpop.permute.xlu0 %1026 }
0x1575   :  { %1030 = vst.msk [vmem:[#allocation4 + $0x18] sm:$0xff] %vm122_vm0, %v1027_v11 }
0x1578   :  { %v751_v26 = vpop.permute.xlu0 %750 }
0x1579   :  { %754 = vst.msk [vmem:[#allocation4 + $0x28] sm:$0xff] %vm122_vm0, %v751_v26 }
0x157c   :  { %v477_v43 = vpop.permute.xlu0 %476  ;;  %v3465_v35 = vld [vmem:[#allocation4 + $0x18] sm:$0xff] }
0x157d   :  { %480 = vst.msk [vmem:[#allocation4 + $0x38] sm:$0xff] %vm122_vm0, %v477_v43 }
0x1580   :  { %v472_v44 = vpop.permute.xlu0 %471  ;;  %v3476_v15 = vld [vmem:[#allocation4 + $0x28] sm:$0xff] }
0x1581   :  { %474 = vst.msk [vmem:[#allocation3] sm:$0xff] %vm122_vm0, %v472_v44 }
0x1584   :  { %v745_v47 = vpop.permute.xlu0 %744  ;;  %v3488_v34 = vld [vmem:[#allocation4 + $0x38] sm:$0xff] }
0x1585   :  { %748 = vst.msk [vmem:[#allocation3 + $0x10] sm:$0xff] %vm122_vm0, %v745_v47 }
0x1588   :  { %v1021_v48 = vpop.permute.xlu0 %1020  ;;  %v3497_v7 = vld [vmem:[#allocation3] sm:$0xff] }
0x1589   :  { %1024 = vst.msk [vmem:[#allocation3 + $0x20] sm:$0xff] %vm122_vm0, %v1021_v48 }
0x158c   :  { %v1297_v53 = vpop.permute.xlu0 %1296  ;;  %v3508_v29 = vld [vmem:[#allocation3 + $0x10] sm:$0xff] }
0x158d   :  { %1300 = vst.msk [vmem:[#allocation3 + $0x30] sm:$0xff] %vm122_vm0, %v1297_v53 }
0x1590   :  { %v3519_v36 = vld [vmem:[#allocation3 + $0x20] sm:$0xff] }
0x15cc   :  { %v1400_v54 = vpop.permute.xlu1 %1399 }
0x15cd   :  { %v1404_v2 = vadd.f32 %v1403_v45, %v1400_v54  ;;  %v1402_v8 = vadd.f32 %v1400_v54, %v1392_v5 }
0x15cf   :  { %2735 = vtanh.f32 %v1404_v2 }
0x15d0   :  { %2737 = vtanh.f32 %v1402_v8 }
0x15d9   :  { %v2736_v9 = vpop.eup %2735 }
0x15da   :  { %1413 = vrot.lane.b32.xlu1 %v2736_v9, %s2828_s27  ;;  %v2738_v55 = vpop.eup %2737 }
0x15de   :  { %1407 = vrot.lane.b32.xlu1 %v2738_v55, %s2828_s27 }
0x164c   :  { %v1414_v59 = vpop.permute.xlu1 %1413 }
0x164d   :  { %v1416_v61 = vmul.f32 %v2734_v12, %v1414_v59 }
0x164f   :  { %v1432_v50 = vmul.f32 %v1430_v1, %v1416_v61  ;;  %v2654_v1 = vld [vmem:[%s3712_s12] sm:$0xff]  }
0x1650   :  { %v1408_v57 = vpop.permute.xlu1 %1407  ;;  %2559 = vmatprep.subr.bf16.mxu1 %v2654_v1 }
0x1651   :  { %1440 = vrot.lane.b32.xlu1 %v1432_v50, %s2827_s1  ;;  %v1410_v49 = vmul.f32 %v2734_v12, %v1408_v57  ;;  %v3529_v12 = vld [vmem:[#allocation3 + $0x30] sm:$0xff]  ;;  %2560 = vmatpush3.bf16.msra.mxu1 %v2654_v1 }
0x1652   :  { %2569 = vmatprep.subr.bf16.mxu1 %v2821_v4 }
0x1653   :  { %v1426_v13 = vmul.f32 %v1424_v0, %v1410_v49  ;;  %v2362_v0 = vld [vmem:[%s3711_s11] ss:$0 sm:$0xff] }
0x1655   :  { %1164 = vrot.lane.b32.xlu1 %v3324_v33, %s2827_s1 }
0x1659   :  { %888 = vrot.lane.b32.xlu1 %v3227_v16, %s2827_s1 }
0x165d   :  { %612 = vrot.lane.b32.xlu1 %v3120_v6, %s2827_s1 }
0x1661   :  { %606 = vrot.lane.b32.xlu1 %v3117_v63, %s2829_s13  ;;  %v3454_v63 = vld [vmem:[#allocation4 + $0x8] sm:$0xff] }
0x1665   :  { %882 = vrot.lane.b32.xlu1 %v3224_v14, %s2829_s13 }
0x1669   :  { %1158 = vrot.lane.b32.xlu1 %v3321_v23, %s2829_s13 }
0x166d   :  { %1434 = vrot.lane.b32.xlu1 %v1426_v13, %s2829_s13  ;;  %s3744_s13 = sld [smem:[#allocation16_spill]] }
0x16c3   :  { %v1441_v33 = vpop.permute.xlu1 %1440 }
0x16c4   :  { %1443 = vst.msk [vmem:[#allocation4] sm:$0xff] %vm122_vm0, %v1441_v33 }
0x16c7   :  { %v1165_v16 = vpop.permute.xlu1 %1164 }
0x16c8   :  { %1168 = vst.msk [vmem:[#allocation4 + $0x10] sm:$0xff] %vm122_vm0, %v1165_v16  ;;  %v2363_v16 = vld [vmem:[#allocation5] ss:$0 sm:$0xff] }
0x16cb   :  { %v889_v6 = vpop.permute.xlu1 %888  ;;  %v3452_v24 = vld [vmem:[#allocation4] sm:$0xff] }
0x16cc   :  { %892 = vst.msk [vmem:[#allocation4 + $0x20] sm:$0xff] %vm122_vm0, %v889_v6  ;;  %v3459_v14 = vpack.c.bf16 %v3454_v63, %v3452_v24 }
0x16ce   :  { %2541 = vmatprep.mubr.msk.bf16.mxu0 %vm122_vm0, %v3459_v14 }
0x16cf   :  { %v613_v23 = vpop.permute.xlu1 %612  ;;  %v3463_v32 = vld [vmem:[#allocation4 + $0x10] sm:$0xff] }
0x16d0   :  { %616 = vst.msk [vmem:[#allocation4 + $0x30] sm:$0xff] %vm122_vm0, %v613_v23  ;;  %v3470_v28 = vpack.c.bf16 %v3465_v35, %v3463_v32 }
0x16d2   :  { %2542 = vmatmul.mubr.msk.bf16.vlgmr.msra.gmra.mrb[32].mxu0 %vm122_vm0, %v3470_v28 }
0x16d3   :  { %2550 = vmatpush3.bf16.msra.mxu0 %v2653_v51  ;;  %v607_v31 = vpop.permute.xlu1 %606  ;;  %v3474_v18 = vld [vmem:[#allocation4 + $0x20] sm:$0xff] }
0x16d4   :  { %610 = vst.msk [vmem:[#allocation3 + $0x8] sm:$0xff] %vm122_vm0, %v607_v31  ;;  %v3481_v25 = vpack.c.bf16 %v3476_v15, %v3474_v18  ;;  %2581 = vmatprep.subr.bf16.mxu0 %v2821_v4 }
0x16d6   :  { %2545 = vmatprep.mubr.msk.bf16.mxu0 %vm122_vm0, %v3481_v25 }
0x16d7   :  { %v883_v37 = vpop.permute.xlu1 %882  ;;  %v3486_v38 = vld [vmem:[#allocation4 + $0x30] sm:$0xff] }
0x16d8   :  { %886 = vst.msk [vmem:[#allocation3 + $0x18] sm:$0xff] %vm122_vm0, %v883_v37  ;;  %v3493_v17 = vpack.c.bf16 %v3488_v34, %v3486_v38  ;;  %v1759_v37 = vld [vmem:[%s3744_s13 + $0x10] sm:$0xff] }
0x16da   :  { %2546 = vmatmul.mubr.msk.bf16.gmra.mrb[36].mxu0 %vm122_vm0, %v3493_v17 }
0x16db   :  { %v1159_v39 = vpop.permute.xlu1 %1158  ;;  %v3499_v40 = vld [vmem:[#allocation3 + $0x8] sm:$0xff] }
0x16dc   :  { %1162 = vst.msk [vmem:[#allocation3 + $0x28] sm:$0xff] %vm122_vm0, %v1159_v39  ;;  %v3504_v27 = vpack.c.bf16 %v3499_v40, %v3497_v7 }
0x16de   :  { %2551 = vmatprep.mubr.msk.bf16.mxu0 %vm122_vm0, %v3504_v27 }
0x16df   :  { %v1435_v10 = vpop.permute.xlu1 %1434  ;;  %v3510_v20 = vld [vmem:[#allocation3 + $0x18] sm:$0xff] }
0x16e0   :  { %1438 = vst.msk [vmem:[#allocation3 + $0x38] sm:$0xff] %vm122_vm0, %v1435_v10  ;;  %v3515_v21 = vpack.c.bf16 %v3510_v20, %v3508_v29  ;;  %v1757_v10 = vld [vmem:[%s3744_s13] sm:$0xff] }
0x16e2   :  { %2552 = vmatmul.mubr.msk.bf16.vlgmr.msra.gmra.mrb[32].mxu0 %vm122_vm0, %v3515_v21 }
0x16e3   :  { %v3521_v30 = vld [vmem:[#allocation3 + $0x28] sm:$0xff] }
0x16e4   :  { %v3525_v22 = vpack.c.bf16 %v3521_v30, %v3519_v36 }
0x16e6   :  { %2555 = vmatprep.mubr.msk.bf16.mxu0 %vm122_vm0, %v3525_v22 }
0x16e7   :  { %v3531_v19 = vld [vmem:[#allocation3 + $0x38] sm:$0xff] }
0x16e8   :  { %v3535_v41 = vpack.c.bf16 %v3531_v19, %v3529_v12 }
0x16ea   :  { %2556 = vmatmul.mubr.msk.bf16.gmra.mrb[36].mxu0 %vm122_vm0, %v3535_v41 }
0x16eb   :  { %2585 = vmatprep.mubr.msk.bf16.mxu0 %vm2822_vm1, %v2821_v4 }
0x17b5   :  { %v2553_v42 = vpop.f32.mrb[32].mxu0 }
0x17b6   :  { %v1647_v11 = vadd.f32 %v2553_v42, %v2362_v0  ;;  %v1607_v26 = vpop.f32.mrb[33].mxu0 }
0x17b7   :  { %v1645_v43 = vadd.f32 %v2362_v0, %v1607_v26  ;;  %v2554_v44 = vpop.f32.mrb[34].mxu0  ;;  %v1763_v26 = vld [vmem:[%s3744_s13 + $0x30] sm:$0xff] }
0x17b8   :  { %2739 = vtanh.f32 %v1647_v11  ;;  %v1648_v47 = vadd.f32 %v2554_v44, %v2362_v0  ;;  %v1610_v48 = vpop.f32.mrb[35].mxu0  ;;  %v1758_v44 = vld [vmem:[%s3744_s13 + $0x8] sm:$0xff] }
0x17b9   :  { %2741 = vtanh.f32 %v1645_v43  ;;  %v1646_v53 = vadd.f32 %v2362_v0, %v1610_v48 }
0x17ba   :  { %2743 = vtanh.f32 %v1648_v47 }
0x17bb   :  { %2745 = vtanh.f32 %v1646_v53  ;;  %v1761_v53 = vld [vmem:[%s3744_s13 + $0x20] sm:$0xff] }
0x17bd   :  { %v2557_v58 = vpop.f32.mrb[36].mxu0 }
0x17be   :  { %v1651_v46 = vadd.f32 %v2557_v58, %v2362_v0  ;;  %v1623_v56 = vpop.f32.mrb[37].mxu0 }
0x17bf   :  { %v1649_v62 = vadd.f32 %v2362_v0, %v1623_v56  ;;  %v2558_v3 = vpop.f32.mrb[38].mxu0 }
0x17c0   :  { %2747 = vtanh.f32 %v1651_v46  ;;  %v1652_v45 = vadd.f32 %v2558_v3, %v2362_v0  ;;  %v1626_v60 = vpop.f32.mrb[39].mxu0 }
0x17c1   :  { %2749 = vtanh.f32 %v1649_v62  ;;  %v1650_v54 = vadd.f32 %v2362_v0, %v1626_v60  ;;  %v1760_v0 = vld [vmem:[%s3744_s13 + $0x18] sm:$0xff] }
0x17c2   :  { %v2740_v2 = vpop.eup %2739  ;;  %2751 = vtanh.f32 %v1652_v45  ;;  %v1764_v62 = vld [vmem:[%s3744_s13 + $0x38] sm:$0xff] }
0x17c3   :  { %v2742_v5 = vpop.eup %2741  ;;  %2753 = vtanh.f32 %v1650_v54 }
0x17c4   :  { %v2744_v8 = vpop.eup %2743 }
0x17c5   :  { %v2746_v9 = vpop.eup %2745  ;;  %v1662_v55 = vpack.c.bf16 %v2744_v8, %v2740_v2  ;;  %v1762_v2 = vld [vmem:[%s3744_s13 + $0x28] sm:$0xff] }
0x17c6   :  { %v1661_v52 = vpack.c.bf16 %v2746_v9, %v2742_v5 }
0x17c8   :  { %2561 = vmatprep.mubr.msk.bf16.mxu1 %vm122_vm0, %v1661_v52 }
0x17c9   :  { %2562 = vmatmul.mubr.msk.bf16.vlgmr.msra.gmra.mrb[16].mxu1 %vm122_vm0, %v1662_v55 }
0x17ca   :  { %v2748_v59 = vpop.eup %2747 }
0x17cb   :  { %v2750_v61 = vpop.eup %2749 }
0x17cc   :  { %v2752_v50 = vpop.eup %2751 }
0x17cd   :  { %v2754_v51 = vpop.eup %2753  ;;  %v1664_v57 = vpack.c.bf16 %v2752_v50, %v2748_v59 }
0x17ce   :  { %v1663_v49 = vpack.c.bf16 %v2754_v51, %v2750_v61 }
0x17d0   :  { %2565 = vmatprep.mubr.msk.bf16.mxu1 %vm122_vm0, %v1663_v49 }
0x17d1   :  { %2566 = vmatmul.mubr.msk.bf16.gmra.mrb[20].mxu1 %vm122_vm0, %v1664_v57 }
0x17d2   :  { %2571 = vmatprep.mubr.msk.bf16.mxu1 %vm2822_vm1, %v2821_v4 }
0x189c   :  { %v2563_v13 = vpop.f32.mrb[16].mxu1 }
0x189d   :  { %v1726_v33 = vpop.f32.mrb[17].mxu1  ;;  %v1735_v31 = vadd.f32 %v2563_v13, %v2363_v16 }
0x189e   :  { %v2564_v6 = vpop.f32.mrb[18].mxu1  ;;  %v1727_v39 = vadd.f32 %v2363_v16, %v1726_v33 }
0x189f   :  { %v1729_v23 = vpop.f32.mrb[19].mxu1  ;;  %v1738_v1 = vadd.f32 %v2564_v6, %v2363_v16  ;;  %v1767_v43 = vadd.f32 %v1759_v37, %v1735_v31 }
0x18a0   :  { %v1730_v42 = vadd.f32 %v2363_v16, %v1729_v23  ;;  %v1765_v58 = vadd.f32 %v1757_v10, %v1727_v39 }
0x18a1   :  { %v1768_v3 = vadd.f32 %v1760_v0, %v1738_v1  ;;  %v1776_v55 = vsel %vm1773_vm4, %v1767_v43, -inf }
0x18a2   :  { %v1766_v5 = vadd.f32 %v1758_v44, %v1730_v42  ;;  %v1774_v61 = vsel %vm1773_vm4, %v1765_v58, -inf }
0x18a3   :  { %v1777_v49 = vsel %vm1773_vm4, %v1768_v3, -inf }
0x18a4   :  { %v2567_v11 = vpop.f32.mrb[20].mxu1  ;;  %v1775_v6 = vsel %vm1773_vm4, %v1766_v5, -inf }
0x18a5   :  { %v1751_v47 = vadd.f32 %v2567_v11, %v2363_v16  ;;  %v1742_v48 = vpop.f32.mrb[21].mxu1 }
0x18a6   :  { %v1743_v46 = vadd.f32 %v2363_v16, %v1742_v48  ;;  %v2568_v56 = vpop.f32.mrb[22].mxu1 }
0x18a7   :  { %v1771_v45 = vadd.f32 %v1763_v26, %v1751_v47  ;;  %v1754_v60 = vadd.f32 %v2568_v56, %v2363_v16  ;;  %v1745_v54 = vpop.f32.mrb[23].mxu1 }
0x18a8   :  { %v1769_v8 = vadd.f32 %v1761_v53, %v1743_v46  ;;  %v1746_v9 = vadd.f32 %v2363_v16, %v1745_v54 }
0x18a9   :  { %v1782_v52 = vsel %vm1773_vm4, %v1771_v45, -inf  ;;  %v1772_v59 = vadd.f32 %v1764_v62, %v1754_v60 }
0x18aa   :  { %v1783_v50 = vmax.f32 %v1776_v55, %v1782_v52  ;;  %v1778_v51 = vsel %vm1773_vm4, %v1769_v8, -inf  ;;  %v1770_v57 = vadd.f32 %v1762_v2, %v1746_v9 }
0x18ab   :  { %v1779_v13 = vmax.f32 %v1774_v61, %v1778_v51  ;;  %v1784_v33 = vsel %vm1773_vm4, %v1772_v59, -inf }
0x18ac   :  { %v1785_v23 = vmax.f32 %v1777_v49, %v1784_v33  ;;  %v1780_v16 = vsel %vm1773_vm4, %v1770_v57, -inf }
0x18ad   :  { %v1781_v31 = vmax.f32 %v1775_v6, %v1780_v16 }
0x18ae   :  { %v1787_v37 = vmax.f32 %v1783_v50, %v1785_v23 }
0x18af   :  { %v1786_v39 = vmax.f32 %v1779_v13, %v1781_v31 }
0x18b1   :  { %v1788_v10 = vmax.f32 %v1786_v39, %v1787_v37 }
0x18b3   :  { %v1789_v1 = vsub.f32 %v1765_v58, %v1788_v10  ;;  %v1790_v0 = vsub.f32 %v1766_v5, %v1788_v10  ;;  %v1791_v42 = vsub.f32 %v1767_v43, %v1788_v10  ;;  %v1792_v11 = vsub.f32 %v1768_v3, %v1788_v10 }
0x18b4   :  { %v1793_v26 = vsub.f32 %v1769_v8, %v1788_v10  ;;  %v1794_v44 = vsub.f32 %v1770_v57, %v1788_v10  ;;  %v1795_v47 = vsub.f32 %v1771_v45, %v1788_v10  ;;  %v1796_v48 = vsub.f32 %v1772_v59, %v1788_v10 }
0x18b5   :  { %v1797_v53 = vmul.f32 1.442695, %v1789_v1  ;;  %v1799_v46 = vmul.f32 1.442695, %v1790_v0  ;;  %v1801_v56 = vmul.f32 1.442695, %v1791_v42 }
0x18b6   :  { %v1803_v62 = vmul.f32 1.442695, %v1792_v11  ;;  %v1805_v60 = vmul.f32 1.442695, %v1793_v26  ;;  %v1807_v54 = vmul.f32 1.442695, %v1794_v44 }
0x18b7   :  { %2755 = vpow2.f32 %v1797_v53  ;;  %v1809_v2 = vmul.f32 1.442695, %v1795_v47  ;;  %v1811_v58 = vmul.f32 1.442695, %v1796_v48 }
0x18b8   :  { %2757 = vpow2.f32 %v1799_v46  ;;  %v2655_v46 = vld [vmem:[%s3715_s15] sm:$0xff]  }
0x18b9   :  { %2759 = vpow2.f32 %v1801_v56  ;;  %2570 = vmatpush3.bf16.msra.mxu1 %v2655_v46 }
0x18ba   :  { %2761 = vpow2.f32 %v1803_v62  ;;  %2575 = vmatprep.subr.bf16.mxu1 %v2821_v4 }
0x18bb   :  { %2763 = vpow2.f32 %v1805_v60 }
0x18bc   :  { %2765 = vpow2.f32 %v1807_v54 }
0x18bd   :  { %2767 = vpow2.f32 %v1809_v2 }
0x18be   :  { %2769 = vpow2.f32 %v1811_v58 }
0x18c1   :  { %v2756_v43 = vpop.eup %2755 }
0x18c2   :  { %v2758_v3 = vpop.eup %2757  ;;  %v1813_v45 = vsel %vm1773_vm4, %v2756_v43, 0.0 }
0x18c3   :  { %v2760_v5 = vpop.eup %2759  ;;  %v1814_v8 = vsel %vm1773_vm4, %v2758_v3, 0.0 }
0x18c4   :  { %v2762_v9 = vpop.eup %2761  ;;  %v1815_v55 = vadd.f32 %v1814_v8, %v1813_v45  ;;  %v1816_v52 = vsel %vm1773_vm4, %v2760_v5, 0.0 }
0x18c5   :  { %v2764_v59 = vpop.eup %2763  ;;  %v1818_v50 = vsel %vm1773_vm4, %v2762_v9, 0.0 }
0x18c6   :  { %v1817_v61 = vadd.f32 %v1816_v52, %v1815_v55  ;;  %v2766_v51 = vpop.eup %2765  ;;  %v1820_v49 = vsel %vm1773_vm4, %v2764_v59, 0.0 }
0x18c7   :  { %v2768_v13 = vpop.eup %2767  ;;  %v1822_v6 = vsel %vm1773_vm4, %v2766_v51, 0.0 }
0x18c8   :  { %v1819_v57 = vadd.f32 %v1818_v50, %v1817_v61  ;;  %v2770_v23 = vpop.eup %2769  ;;  %v1824_v31 = vsel %vm1773_vm4, %v2768_v13, 0.0 }
0x18c9   :  { %v1826_v39 = vsel %vm1773_vm4, %v2770_v23, 0.0 }
0x18ca   :  { %v1821_v33 = vadd.f32 %v1820_v49, %v1819_v57 }
0x18cc   :  { %v1823_v16 = vadd.f32 %v1822_v6, %v1821_v33 }
0x18ce   :  { %v1825_v37 = vadd.f32 %v1824_v31, %v1823_v16 }
0x18d0   :  { %v1827_v10 = vadd.f32 %v1826_v39, %v1825_v37 }
0x18d2   :  { %2771 = vrcp.f32 %v1827_v10 }
0x18dc   :  { %v2772_v1 = vpop.eup %2771 }
0x18dd   :  { %v1830_v0 = vmul.f32 %v2772_v1, %v2758_v3  ;;  %v1829_v42 = vmul.f32 %v2772_v1, %v2756_v43  ;;  %v1832_v11 = vmul.f32 %v2772_v1, %v2762_v9  ;;  %v1831_v26 = vmul.f32 %v2772_v1, %v2760_v5 }
0x18de   :  { %v1834_v44 = vmul.f32 %v2772_v1, %v2766_v51  ;;  %v1833_v47 = vmul.f32 %v2772_v1, %v2764_v59  ;;  %v1836_v48 = vmul.f32 %v2772_v1, %v2770_v23  ;;  %v1835_v53 = vmul.f32 %v2772_v1, %v2768_v13 }
0x18df   :  { %1844 = vperm.xlu1 %2638, %v1830_v0   ;;  %1839 = vperm.xlu0 %2639, %v1829_v42  }
0x18e3   :  { %1854 = vperm.xlu1 %2638, %v1832_v11   ;;  %1849 = vperm.xlu0 %2639, %v1831_v26  }
0x18e7   :  { %1864 = vperm.xlu1 %2638, %v1834_v44   ;;  %1859 = vperm.xlu0 %2639, %v1833_v47  }
0x18eb   :  { %1874 = vperm.xlu1 %2638, %v1836_v48   ;;  %1869 = vperm.xlu0 %2639, %v1835_v53  }
0x195e   :  { %v1845_v56 = vpop.permute.xlu1 %1844  ;;  %v1840_v62 = vpop.permute.xlu0 %1839 }
0x195f   :  { %v1878_v60 = vmul.f32 %v1845_v56, %v3499_v40  ;;  %v1901_v54 = vmul.f32 %v1845_v56, %v3454_v63  ;;  %v1877_v2 = vmul.f32 %v1840_v62, %v3497_v7  ;;  %v1900_v58 = vmul.f32 %v1840_v62, %v3452_v24  ;;  %v2657_v56 = vld [vmem:[%s3720_s20] sm:$0xff]  }
0x1961   :  { %v1886_v43 = vsel %vm122_vm0, %v1878_v60, 0.0  ;;  %v1909_v3 = vsel %vm122_vm0, %v1901_v54, 0.0  ;;  %v1885_v45 = vsel %vm122_vm0, %v1877_v2, 0.0  ;;  %v1908_v5 = vsel %vm122_vm0, %v1900_v58, 0.0  ;;  %v2658_v54 = vld [vmem:[%s3719_s19] sm:$0xff]  }
0x1962   :  { %v1855_v8 = vpop.permute.xlu1 %1854  ;;  %v1850_v9 = vpop.permute.xlu0 %1849  ;;  %v1887_v52 = vadd.f32 %v1886_v43, %v1885_v45  ;;  %v1910_v24 = vadd.f32 %v1909_v3, %v1908_v5  ;;  %v2388_v5 = vld [vmem:[%s3721_s21] ss:$0 sm:$0xff] }
0x1963   :  { %v1880_v55 = vmul.f32 %v1855_v8, %v3510_v20  ;;  %v1903_v40 = vmul.f32 %v1855_v8, %v3465_v35  ;;  %v1879_v63 = vmul.f32 %v1850_v9, %v3508_v29  ;;  %v1902_v7 = vmul.f32 %v1850_v9, %v3463_v32 }
0x1965   :  { %v1888_v59 = vsel %vm122_vm0, %v1879_v63, 0.0  ;;  %v1911_v61 = vsel %vm122_vm0, %v1902_v7, 0.0  ;;  %v1890_v50 = vsel %vm122_vm0, %v1880_v55, 0.0  ;;  %v1913_v20 = vsel %vm122_vm0, %v1903_v40, 0.0 }
0x1966   :  { %v1889_v51 = vadd.f32 %v1888_v59, %v1887_v52  ;;  %v1912_v57 = vadd.f32 %v1911_v61, %v1910_v24  ;;  %v1865_v49 = vpop.permute.xlu1 %1864  ;;  %v1860_v13 = vpop.permute.xlu0 %1859 }
0x1967   :  { %v1905_v35 = vmul.f32 %v1865_v49, %v3476_v15  ;;  %v1881_v29 = vmul.f32 %v1860_v13, %v3519_v36  ;;  %v1904_v32 = vmul.f32 %v1860_v13, %v3474_v18  ;;  %v1882_v23 = vmul.f32 %v1865_v49, %v3521_v30 }
0x1968   :  { %v1891_v33 = vadd.f32 %v1890_v50, %v1889_v51  ;;  %v1914_v6 = vadd.f32 %v1913_v20, %v1912_v57 }
0x1969   :  { %v1892_v16 = vsel %vm122_vm0, %v1881_v29, 0.0  ;;  %v1915_v31 = vsel %vm122_vm0, %v1904_v32, 0.0  ;;  %v1917_v0 = vsel %vm122_vm0, %v1905_v35, 0.0  ;;  %v1894_v11 = vsel %vm122_vm0, %v1882_v23, 0.0 }
0x196a   :  { %v1893_v37 = vadd.f32 %v1892_v16, %v1891_v33  ;;  %v1916_v39 = vadd.f32 %v1915_v31, %v1914_v6  ;;  %v1875_v10 = vpop.permute.xlu1 %1874  ;;  %v1870_v1 = vpop.permute.xlu0 %1869 }
0x196b   :  { %v1907_v15 = vmul.f32 %v1875_v10, %v3488_v34  ;;  %v1883_v36 = vmul.f32 %v1870_v1, %v3529_v12  ;;  %v1906_v18 = vmul.f32 %v1870_v1, %v3486_v38  ;;  %v1884_v46 = vmul.f32 %v1875_v10, %v3531_v19  ;;  %v2656_v34 = vld [vmem:[%s3714_s14] sm:$0xff]  }
0x196c   :  { %v1918_v42 = vadd.f32 %v1917_v0, %v1916_v39  ;;  %v1895_v26 = vadd.f32 %v1894_v11, %v1893_v37 }
0x196d   :  { %v1919_v30 = vsel %vm122_vm0, %v1906_v18, 0.0  ;;  %v1921_v47 = vsel %vm122_vm0, %v1907_v15, 0.0  ;;  %v1896_v48 = vsel %vm122_vm0, %v1883_v36, 0.0  ;;  %v1898_v62 = vsel %vm122_vm0, %v1884_v46, 0.0 }
0x196e   :  { %v1920_v44 = vadd.f32 %v1919_v30, %v1918_v42  ;;  %v1897_v12 = vadd.f32 %v1896_v48, %v1895_v26 }
0x1970   :  { %v1922_v53 = vadd.f32 %v1921_v47, %v1920_v44  ;;  %v1899_v60 = vadd.f32 %v1898_v62, %v1897_v12 }
0x1972   :  { %v1926_v38 = vpack.c.bf16 %v1922_v53, %v1922_v53  ;;  %v1923_v19 = vpack.c.bf16 %v1899_v60, %v1899_v60 }
0x1974   :  { %2572 = vmatmul.mubr.msk.bf16.vlgmr.msra.gmra.mrb[24].mxu1 %vm122_vm0, %v1926_v38 }
0x1975   :  { %2576 = vmatpush3.bf16.msra.mxu1 %v2656_v34  ;;  %2577 = vmatprep.mubr.msk.bf16.mxu1 %vm2822_vm1, %v2821_v4 }
0x1976   :  { %2589 = vmatprep.subr.bf16.mxu1 %v2657_v56 }
0x197c   :  { %2578 = vmatmul.mubr.msk.bf16.vlgmr.msra.gmra.mrb[28].mxu1 %vm122_vm0, %v1923_v19 }
0x197d   :  { %2591 = vmatprep.mubr.msk.bf16.mxu1 %vm122_vm0, %v3459_v14  ;;  %2590 = vmatpush3.bf16.msra.mxu1 %v2657_v56  ;;  %v2659_v14 = vld [vmem:[%s3717_s17] sm:$0xff]  }
0x197e   :  { %2599 = vmatprep.subr.bf16.mxu1 %v2658_v54  ;;  %2582 = vmatpush3.bf16.msra.mxu0 %v2659_v14 }
0x197f   :  { %2583 = vmatprep.subr.bf16.mxu0 %v2821_v4 }
0x1984   :  { %2592 = vmatmul.mubr.msk.bf16.vlgmr.msra.gmra.mrb[32].mxu1 %vm122_vm0, %v3470_v28  ;;  %v2660_v28 = vld [vmem:[%s3717_s17 + $0x8] sm:$0xff]  }
0x1985   :  { %2595 = vmatprep.mubr.msk.bf16.mxu1 %vm122_vm0, %v3481_v25  ;;  %2600 = vmatpush3.bf16.msra.mxu1 %v2658_v54 }
0x1986   :  { %2584 = vmatpush3.bf16.msra.mxu0 %v2660_v28 }
0x198c   :  { %2596 = vmatmul.mubr.msk.bf16.gmra.mrb[36].mxu1 %vm122_vm0, %v3493_v17 }
0x198d   :  { %2601 = vmatprep.mubr.msk.bf16.mxu1 %vm122_vm0, %v3504_v27 }
0x1994   :  { %2602 = vmatmul.mubr.msk.bf16.vlgmr.msra.gmra.mrb[32].mxu1 %vm122_vm0, %v3515_v21 }
0x1995   :  { %2605 = vmatprep.mubr.msk.bf16.mxu1 %vm122_vm0, %v3525_v22 }
0x199c   :  { %2606 = vmatmul.mubr.msk.bf16.gmra.mrb[36].mxu1 %vm122_vm0, %v3535_v41  ;;  %v2373_v41 = vld [vmem:[%s3716_s16] ss:$0 sm:$0xff]  ;;  %s2830_s16 = smov [#allocation8]  }
0x199d   :  { %s2287_s21 = sshll.u32 %s2830_s16, 4  ;;  %s2288_s21 = int_to_ptr.vmem [resolvable:$true] %s2287_s21 }
0x199e   :  { %s2773_s28 = scalar_lea.vmem %s2288_s21, 1024  ;;  %p2778_p1 = scmp.lt.s32.totalorder %s2288_s21, %s2288_s21 }
0x199f   :  { %p2774_p0 = scmp.ne.s32.totalorder %s2288_s21, %s2773_s28  ;;  %p2779_p2 = scmp.lt.s32.totalorder %s2773_s28, %s2773_s28 }
0x19a1   :  { %p2780_p3 = por %p2779_p2, %p2778_p1 }
0x19a3   :  { %p2781_p4 = pnand %p2780_p3, %p2774_p0 }
0x1a47   :  { %v1972_v25 = vpop.f32.mrb[24].mxu1 }
0x1a48   :  { %v2573_v17 = vpop.f32.mrb[25].mxu1 }
0x1a49   :  { %v1975_v27 = vpop.f32.mrb[26].mxu1 }
0x1a4a   :  { %v2574_v21 = vpop.f32.mrb[27].mxu1 }
0x1a4f   :  { %v2021_v22 = vpop.f32.mrb[28].mxu1 }
0x1a50   :  { %v2022_v2 = vadd.f32 %v2021_v22, %v1972_v25  ;;  %v2579_v58 = vpop.f32.mrb[29].mxu1 }
0x1a51   :  { %v2024_v43 = vpop.f32.mrb[30].mxu1 }
0x1a52   :  { %v2034_v3 = vadd.f32 %v2373_v41, %v2022_v2  ;;  %v2580_v45 = vpop.f32.mrb[31].mxu1 }
0x1a54   :  { %v2035_v4 = vpack.c.bf16 %v2034_v3, %v2034_v3 }
0x1a56   :  { %2586 = vmatmul.mubr.msk.bf16.vlgmr.msra.gmra.mrb[40].mxu0 %vm387_vm3, %v2035_v4 }
0x1a67   :  { %v2603_v8 = vpop.f32.mrb[32].mxu1 }
0x1a68   :  { %v2258_v9 = vadd.f32 %v2603_v8, %v2388_v5  ;;  %v2218_v55 = vpop.f32.mrb[33].mxu1 }
0x1a69   :  { %v2256_v40 = vadd.f32 %v2388_v5, %v2218_v55  ;;  %v2604_v63 = vpop.f32.mrb[34].mxu1 }
0x1a6a   :  { %2266 = vst [vmem:[#allocation8 + $0x10] sm:$0xff] %v2258_v9  ;;  %v2259_v7 = vadd.f32 %v2604_v63, %v2388_v5  ;;  %v2221_v52 = vpop.f32.mrb[35].mxu1 }
0x1a6b   :  { %2264 = vst [vmem:[#allocation8] sm:$0xff] %v2256_v40  ;;  %v2257_v24 = vadd.f32 %v2388_v5, %v2221_v52 }
0x1a6c   :  { %2267 = vst [vmem:[#allocation8 + $0x18] sm:$0xff] %v2259_v7 }
0x1a6d   :  { %2265 = vst [vmem:[#allocation8 + $0x8] sm:$0xff] %v2257_v24 }
0x1a6f   :  { %v2607_v59 = vpop.f32.mrb[36].mxu1 }
0x1a70   :  { %v2262_v61 = vadd.f32 %v2607_v59, %v2388_v5  ;;  %v2234_v50 = vpop.f32.mrb[37].mxu1 }
0x1a71   :  { %v2260_v51 = vadd.f32 %v2388_v5, %v2234_v50  ;;  %v2608_v57 = vpop.f32.mrb[38].mxu1 }
0x1a72   :  { %2270 = vst [vmem:[#allocation8 + $0x30] sm:$0xff] %v2262_v61  ;;  %v2263_v49 = vadd.f32 %v2608_v57, %v2388_v5  ;;  %v2237_v13 = vpop.f32.mrb[39].mxu1 }
0x1a73   :  { %2268 = vst [vmem:[#allocation8 + $0x20] sm:$0xff] %v2260_v51  ;;  %v2261_v20 = vadd.f32 %v2388_v5, %v2237_v13 }
0x1a74   :  { %2271 = vst [vmem:[#allocation8 + $0x38] sm:$0xff] %v2263_v49 }
0x1a75   :  { %2269 = vst [vmem:[#allocation8 + $0x28] sm:$0xff] %v2261_v20 }
0x1a76   :  { %2784 = shalt.err (!%p2781_p4)
}
0x1a77   :  { %s2785_s0 = scalar_lea.hbm %s3723_s23, 1024 }
0x1a78   :  { %p2786_p5 = scmp.ne.s32.totalorder %s3723_s23, %s2785_s0  ;;  %p2789_p6 = scmp.lt.u32.totalorder %s2785_s0, %s3723_s23 }
0x1a7a   :  { %p2791_p7 = pnand %p2789_p6, %p2786_p5 }
0x1a7c   :  { %2794 = shalt.err (!%p2791_p7)
}
0x1a7d   :  { %s2831_s2 = smov 128   ;;  %s2832_s25 = smov 8   ;;  %v2374_v35 = vld [vmem:[%s3718_s18] ss:$0 sm:$0xff] }
0x1a7e   :  { %2293 = dma.vmem_to_hbm [thread:$0]  %s2288_s21, 1024, %s3723_s23, [#allocation9], %s2831_s2, %s2831_s2, %s2832_s25  }
0x1a7f   :  { %s2833_s27 = smov [#allocation6]  }
0x1a80   :  { %s2278_s11 = sshll.u32 %s2833_s27, 4  ;;  %s2279_s11 = int_to_ptr.vmem [resolvable:$true] %s2278_s11 }
0x1a81   :  { %s2795_s12 = scalar_lea.vmem %s2279_s11, 128  ;;  %p2800_p9 = scmp.lt.s32.totalorder %s2279_s11, %s2279_s11 }
0x1a82   :  { %p2796_p8 = scmp.ne.s32.totalorder %s2279_s11, %s2795_s12  ;;  %p2801_p10 = scmp.lt.s32.totalorder %s2795_s12, %s2795_s12 }
0x1a84   :  { %p2802_p11 = por %p2801_p10, %p2800_p9 }
0x1a86   :  { %p2803_p12 = pnand %p2802_p11, %p2796_p8 }
0x1b29   :  { %v2096_v29 = vpop.f32.mrb[40].mxu0 }
0x1b2a   :  { %v2097_v32 = vadd.f32 %v2374_v35, %v2096_v29  ;;  %v2587_v33 = vpop.f32.mrb[41].mxu0 }
0x1b2b   :  { %v2099_v6 = vpop.f32.mrb[42].mxu0 }
0x1b2c   :  { %2102 = vst [vmem:[#allocation6] sm:$0xff] %v2097_v32  ;;  %v2588_v23 = vpop.f32.mrb[43].mxu0 }
0x1b2d   :  { %2806 = shalt.err (!%p2803_p12)
}
0x1b2e   :  { %s2807_s18 = scalar_lea.hbm %s3722_s22, 128 }
0x1b2f   :  { %p2808_p13 = scmp.ne.s32.totalorder %s3722_s22, %s2807_s18  ;;  %p2811_p0 = scmp.lt.u32.totalorder %s2807_s18, %s3722_s22 }
0x1b31   :  { %p2813_p1 = pnand %p2811_p0, %p2808_p13 }
0x1b33   :  { %2816 = shalt.err (!%p2813_p1)
}
0x1b34   :  { %2281 = dma.vmem_to_hbm [thread:$0]  %s2279_s11, 128, %s3722_s22, [#allocation7]  }
0x1b35   :  { %2817 = dma.done.wait [#allocation7], 128  }
0x1b36   :  { %2818 = vsyncadd [#allocation7], 4294967168 }
0x1b37   :  { %2819 = dma.done.wait [#allocation9], 1024  }
0x1b38   :  { %2820 = vsyncadd [#allocation9], 4294966272 }
0x1b39   :  { %2300 = vsyncpa [#allocation7], 1 }
0x1b3a   :  { %2301 = vsyncpa [#allocation9], 1 }

</bundles_post_ra>
